<compile_context>
chip_gen: v7x
topology: tpu7x:2x2x1
jax: 0.10.0
libtpu: 0.0.40
codegen_flags: <defaults>
</compile_context>

<pallas_src>
import functools

import numpy as np
import jax
import jax.numpy as jnp
from jax.experimental import pallas as pl
from jax.experimental.pallas import tpu as pltpu


# ------------------------------ fused kernel -------------------------------- #

def _multires_unet_kernel(x_ref, w_ref, b_ref, o_ref, scr_ref, *, cfg):
    f32 = jnp.float32
    B, L = cfg["B"], cfg["L"]
    pool_k, kblk, kres, ktr = cfg["pool_k"], cfg["kblk"], cfg["kres"], cfg["ktr"]
    c_bn = cfg["c_bn"]
    meta = cfg["meta"]
    Lp = L // pool_k
    BL, BLp = B * L, B * Lp

    # Static carve-outs from the packed weight / bias slabs (single DMA each).
    def w_of(name):
        rows, off, cout = meta[name]
        return w_ref[0:rows, off:off + cout]

    def b_of(name):
        _, off, cout = meta[name]
        return b_ref[0:1, off:off + cout]

    def row_in_elem(n_rows, per_len):
        # Local (within-series) row index without integer div/mod:
        # (B-1) conditional subtractions on an int32 iota, hoisted (built once).
        r = jax.lax.broadcasted_iota(jnp.int32, (n_rows, 1), 0)
        for _ in range(n_rows // per_len - 1):
            r = jnp.where(r >= per_len, r - per_len, r)
        return r

    ridx_L = row_in_elem(BL, L)
    ridx_Lp = row_in_elem(BLp, Lp)

    def shift_rows(x, off, ridx, per_len):
        # y[l] = x[l + off] within each series, zero outside its bounds.
        # XLU sublane roll + VPU edge mask (replaces the old banded shift matmuls).
        if off == 0:
            return x
        n = x.shape[0]
        y = pltpu.roll(x, (-off) % n, axis=0)
        valid = (ridx + off >= 0) & (ridx + off <= per_len - 1)
        return jnp.where(valid, y, 0.0)

    def conv_same(x, name, K, ridx, per_len, relu):
        # im2col 'same' conv: K shifted copies lane-concatenated -> ONE MXU dot
        # against the pre-flattened (K*Cin, Cout) weight.
        w, b = w_of(name), b_of(name)
        if K == 1:
            y = jnp.dot(x, w, preferred_element_type=f32) + b
        else:
            pad = (K - 1) // 2
            cols = [shift_rows(x, k - pad, ridx, per_len) for k in range(K)]
            y = jnp.dot(jnp.concatenate(cols, axis=1), w,
                        preferred_element_type=f32) + b
        return jnp.maximum(y, 0.0) if relu else y

    def mres_block(x, prefix, ridx, per_len):
        # MultiRes block: 1x1 shortcut + 3 chained convs, lane concat (no
        # placement matmuls), residual add, ReLU.
        sc = conv_same(x, prefix + "_sc", 1, ridx, per_len, relu=False)
        a = conv_same(x, prefix + "_c1", kblk, ridx, per_len, relu=True)
        b2 = conv_same(a, prefix + "_c2", kblk, ridx, per_len, relu=True)
        c = conv_same(b2, prefix + "_c3", kblk, ridx, per_len, relu=True)
        return jnp.maximum(sc + jnp.concatenate([a, b2, c], axis=1), 0.0)

    x = x_ref[...].astype(f32)                       # (B*L, Cin), batch in sublanes

    # ------------------- encoder MultiRes block + ResPath skip -------------------
    enc = mres_block(x, "enc", ridx_L, L)                                # (B*L, Ce)
    res_sc = conv_same(enc, "res_sc", 1, ridx_L, L, relu=False)
    skip = jnp.maximum(
        conv_same(enc, "res_c", kres, ridx_L, L, relu=True) + res_sc, 0.0)

    # --------- max-pool (kernel == stride): strided sublane loads, no matmul -----
    scr_ref[...] = enc
    pooled = scr_ref[pl.ds(0, BLp, stride=pool_k), :]
    for j in range(1, pool_k):
        pooled = jnp.maximum(pooled, scr_ref[pl.ds(j, BLp, stride=pool_k), :])

    # ------------------------------ bottleneck block -----------------------------
    bott = mres_block(pooled, "bn", ridx_Lp, Lp)                        # (B*Lp, Cb)

    # ------ transpose conv (kernel == stride): strided-store interleave ---------
    w_up, b_up = w_of("up"), b_of("up")
    for k in range(ktr):
        yk = jnp.dot(bott, w_up[k * c_bn:(k + 1) * c_bn, :],
                     preferred_element_type=f32)
        scr_ref[pl.ds(k, BLp, stride=ktr), :] = yk      # out[ktr*l + k] = x[l]@w[k]
    up = scr_ref[...] + b_up                                            # (B*L, Ce)

    # ------------- decoder MultiRes block over [up ++ skip] + 1x1 head -----------
    dec = mres_block(jnp.concatenate([up, skip], axis=1), "dec", ridx_L, L)
    logits = conv_same(dec, "head", 1, ridx_L, L, relu=False)           # (B*L, ncls)
    o_ref[...] = logits.astype(o_ref.dtype)


# ------------------------------ host-side model ----------------------------- #

def _multires_channels(filters, alpha, rates):
    W = alpha * filters
    cs = [max(1, int(W * r)) for r in rates]      # guard against 0-width branches
    return cs, sum(cs)


class MultiResUnetPallas:
    def __init__(self, para, alpha=1.67, seed=0):
        self.alpha = float(alpha)
        self.para = dict(para)
        rates = para.get("Filter rate", [1.0 / 6.0, 1.0 / 3.0, 1.0 / 2.0])
        self.kblk = int(para.get("Block kernel", 3))
        self.kres = int(para["Respath kernel"])
        self.pool_k = int(para["Pooling kernel"])
        self.ktr = int(para["Transpose kernel"])
        self.cin = int(para.get("In channels", 1))
        self.ncls = int(para["Number class"])
        f_enc, f_bn = para["Filter nums"]
        assert self.ktr == self.pool_k, "decoder upsample must undo the pooling"
        assert self.kblk % 2 == 1 and self.kres % 2 == 1, "'same' pad assumes odd K"

        cs_e, c_enc = _multires_channels(f_enc, alpha, rates)
        cs_b, c_bn = _multires_channels(f_bn, alpha, rates)
        self.c_enc, self.c_bn = c_enc, c_bn

        # Layer table: (name, rows, cout). Weights are stored pre-flattened to
        # (K*Cin, Cout) (tap-major rows) so every conv is a single im2col matmul.
        layers = []
        add = lambda n, r, c: layers.append((n, int(r), int(c)))
        kb, kr, kt, cin = self.kblk, self.kres, self.ktr, self.cin

        add("enc_sc", cin, c_enc)
        add("enc_c1", kb * cin, cs_e[0])
        add("enc_c2", kb * cs_e[0], cs_e[1])
        add("enc_c3", kb * cs_e[1], cs_e[2])
        add("res_sc", c_enc, c_enc)
        add("res_c", kr * c_enc, c_enc)
        add("bn_sc", c_enc, c_bn)
        add("bn_c1", kb * c_enc, cs_b[0])
        add("bn_c2", kb * cs_b[0], cs_b[1])
        add("bn_c3", kb * cs_b[1], cs_b[2])
        add("up", kt * c_bn, c_enc)
        dec_in = 2 * c_enc                         # decoder input is [up ++ skip]
        add("dec_sc", dec_in, c_enc)
        add("dec_c1", kb * dec_in, cs_e[0])        # true-concat fan-in init
        add("dec_c2", kb * cs_e[0], cs_e[1])
        add("dec_c3", kb * cs_e[1], cs_e[2])
        add("head", c_enc, self.ncls)

        # Pack everything into one weight slab + one bias slab (3 input DMAs total
        # for the kernel instead of ~35 tiny double-buffered ones).
        rmax = max(r for _, r, _ in layers)
        ctot = sum(c for _, _, c in layers)
        wpack = np.zeros((rmax, ctot), np.float32)
        bpack = np.zeros((1, ctot), np.float32)
        meta = {}
        rng = np.random.default_rng(seed)
        off = 0
        for name, rows, cout in layers:
            w = rng.standard_normal((rows, cout)).astype(np.float32) / np.sqrt(rows)
            b = (0.01 * rng.standard_normal((1, cout))).astype(np.float32)
            wpack[:rows, off:off + cout] = w
            bpack[:, off:off + cout] = b
            meta[name] = (rows, off, cout)
            off += cout
        self.wpack = jnp.asarray(wpack)
        self.bpack = jnp.asarray(bpack)
        self.meta = meta

    def __call__(self, x_ncl):
        B, Cin, L = x_ncl.shape
        assert Cin == self.cin
        assert L % self.pool_k == 0
        BL = B * L

        # PyTorch NCL -> channels-last with batch folded into the sublane axis.
        x2d = jnp.transpose(x_ncl, (0, 2, 1)).reshape(BL, Cin).astype(jnp.float32)

        cfg = dict(B=B, L=L, pool_k=self.pool_k, kblk=self.kblk, kres=self.kres,
                   ktr=self.ktr, c_bn=self.c_bn, meta=self.meta)
        kernel = functools.partial(_multires_unet_kernel, cfg=cfg)

        out2d = pl.pallas_call(
            kernel,
            out_shape=jax.ShapeDtypeStruct((BL, self.ncls), jnp.float32),
            grid=(1,),                                   # whole batch in one step
            in_specs=[pl.BlockSpec((BL, Cin), lambda i: (0, 0)),
                      pl.BlockSpec(self.wpack.shape, lambda i: (0, 0)),
                      pl.BlockSpec(self.bpack.shape, lambda i: (0, 0))],
            out_specs=pl.BlockSpec((BL, self.ncls), lambda i: (0, 0)),
            scratch_shapes=[pltpu.VMEM((BL, self.c_enc), jnp.float32)],
            compiler_params=pltpu.CompilerParams(
                dimension_semantics=("arbitrary",)),
        )(x2d, self.wpack, self.bpack)

        # TODO(synk): the final NCL relayout stays in the wrapper (one tiny XLA op
        # at L=16); fold it into the out_spec only if the series length scales up.
        return jnp.transpose(out2d.reshape(B, L, self.ncls), (0, 2, 1))


# ---------------------------------- main ------------------------------------ #

if __name__ == "__main__":
    para = {
        "Number class": 3,
        "Serie length": 16,
        "Filter nums": [8, 16],
        "Expand": 2,
        "Respath kernel": 3,
        "Block kernel": 3,
        "Filter rate": [1.0 / 6.0, 1.0 / 3.0, 1.0 / 2.0],
        "Pooling kernel": 2,
        "Transpose kernel": 2,
        "In channels": 4,   # not in the reference para dict; needed to size the stem
    }

    model = MultiResUnetPallas(para, alpha=1.67, seed=0)

    key = jax.random.PRNGKey(0)
    B, C, L = 2, para["In channels"], para["Serie length"]
    x = jax.random.normal(key, (B, C, L), jnp.float32)   # PyTorch-style NCL input

    out = jax.block_until_ready(model(x))
    assert out.shape == (B, para["Number class"], L), out.shape
    assert bool(jnp.all(jnp.isfinite(out)))
    print("KERNEL_OK")
</pallas_src>

<mosaic_0001>
module attributes {stable_mosaic.version = 11 : i64} {
  func.func @_multires_unet_kernel(%arg0: i32, %arg1: memref<32x4xf32, #tpu.memory_space<vmem>>, %arg2: memref<72x137xf32, #tpu.memory_space<vmem>>, %arg3: memref<1x137xf32, #tpu.memory_space<vmem>>, %arg4: memref<32x3xf32, #tpu.memory_space<vmem>>, %arg5: memref<32x12xf32, #tpu.memory_space<vmem>>) attributes {dimension_semantics = [#tpu.dimension_semantics<arbitrary>], iteration_bounds = array<i64: 1>, scalar_prefetch = 0 : i64, scratch_operands = 1 : i64, tpu.core_type = #tpu.core_type<tc>, window_params = [{pipeline_mode = #tpu.pipeline_mode<synchronous>, transform_indices = @transform_0, window_bounds = array<i64: 32, 4>}, {pipeline_mode = #tpu.pipeline_mode<synchronous>, transform_indices = @transform_1, window_bounds = array<i64: 72, 137>}, {pipeline_mode = #tpu.pipeline_mode<synchronous>, transform_indices = @transform_2, window_bounds = array<i64: 1, 137>}, {pipeline_mode = #tpu.pipeline_mode<synchronous>, transform_indices = @transform_3, window_bounds = array<i64: 32, 3>}]} {
    %0 = tpu.iota {dimensions = array<i32: 0>} : vector<32x1xi32>
    %c16_i32 = arith.constant 16 : i32
    %1 = vector.broadcast %c16_i32 : i32 to vector<32x1xi32>
    %2 = arith.cmpi sge, %0, %1 : vector<32x1xi32>
    %c16_i32_0 = arith.constant 16 : i32
    %3 = vector.broadcast %c16_i32_0 : i32 to vector<32x1xi32>
    %4 = arith.subi %0, %3 : vector<32x1xi32>
    %5 = arith.select %2, %4, %0 : vector<32x1xi1>, vector<32x1xi32>
    %6 = tpu.iota {dimensions = array<i32: 0>} : vector<16x1xi32>
    %c8_i32 = arith.constant 8 : i32
    %7 = vector.broadcast %c8_i32 : i32 to vector<16x1xi32>
    %8 = arith.cmpi sge, %6, %7 : vector<16x1xi32>
    %c8_i32_1 = arith.constant 8 : i32
    %9 = vector.broadcast %c8_i32_1 : i32 to vector<16x1xi32>
    %10 = arith.subi %6, %9 : vector<16x1xi32>
    %11 = arith.select %8, %10, %6 : vector<16x1xi1>, vector<16x1xi32>
    %c0 = arith.constant 0 : index
    %c0_2 = arith.constant 0 : index
    %12 = vector.load %arg1[%c0, %c0_2] : memref<32x4xf32, #tpu.memory_space<vmem>>, vector<32x4xf32>
    %c0_3 = arith.constant 0 : index
    %c0_4 = arith.constant 0 : index
    %13 = vector.load %arg2[%c0_3, %c0_4] : memref<72x137xf32, #tpu.memory_space<vmem>>, vector<4x12xf32>
    %c0_5 = arith.constant 0 : index
    %c0_6 = arith.constant 0 : index
    %14 = vector.load %arg3[%c0_5, %c0_6] : memref<1x137xf32, #tpu.memory_space<vmem>>, vector<1x12xf32>
    %cst = arith.constant dense<0.000000e+00> : vector<32x12xf32>
    %15 = tpu.matmul %12, %13, %cst {dimension_numbers = #tpu.dot_dimension_numbers<[1], [0], [0], [1], [0, 0, 1, 1], [], []>} : vector<32x4xf32>, vector<4x12xf32>, vector<32x12xf32> -> vector<32x12xf32>
    %16 = vector.broadcast %14 : vector<1x12xf32> to vector<32x12xf32>
    %17 = arith.addf %15, %16 : vector<32x12xf32>
    %c0_7 = arith.constant 0 : index
    %c12 = arith.constant 12 : index
    %18 = vector.load %arg2[%c0_7, %c12] : memref<72x137xf32, #tpu.memory_space<vmem>>, vector<12x2xf32>
    %c0_8 = arith.constant 0 : index
    %c12_9 = arith.constant 12 : index
    %19 = vector.load %arg3[%c0_8, %c12_9] : memref<1x137xf32, #tpu.memory_space<vmem>>, vector<1x2xf32>
    %c1_i32 = arith.constant 1 : i32
    %20 = tpu.dynamic_rotate %12 by %c1_i32 dim 0 : vector<32x4xf32>, i32 -> vector<32x4xf32>
    %c-1_i32 = arith.constant -1 : i32
    %21 = vector.broadcast %c-1_i32 : i32 to vector<32x1xi32>
    %22 = arith.addi %5, %21 : vector<32x1xi32>
    %c0_i32 = arith.constant 0 : i32
    %23 = vector.broadcast %c0_i32 : i32 to vector<32x1xi32>
    %24 = arith.cmpi sge, %22, %23 : vector<32x1xi32>
    %c-1_i32_10 = arith.constant -1 : i32
    %25 = vector.broadcast %c-1_i32_10 : i32 to vector<32x1xi32>
    %26 = arith.addi %5, %25 : vector<32x1xi32>
    %c15_i32 = arith.constant 15 : i32
    %27 = vector.broadcast %c15_i32 : i32 to vector<32x1xi32>
    %28 = arith.cmpi sle, %26, %27 : vector<32x1xi32>
    %29 = arith.andi %24, %28 : vector<32x1xi1>
    %cst_11 = arith.constant 0.000000e+00 : f32
    %30 = vector.shape_cast %29 : vector<32x1xi1> to vector<32x1xi1>
    %31 = vector.broadcast %30 : vector<32x1xi1> to vector<32x4xi1>
    %32 = vector.broadcast %cst_11 : f32 to vector<32x4xf32>
    %33 = arith.select %31, %20, %32 : vector<32x4xi1>, vector<32x4xf32>
    %c31_i32 = arith.constant 31 : i32
    %34 = tpu.dynamic_rotate %12 by %c31_i32 dim 0 : vector<32x4xf32>, i32 -> vector<32x4xf32>
    %c1_i32_12 = arith.constant 1 : i32
    %35 = vector.broadcast %c1_i32_12 : i32 to vector<32x1xi32>
    %36 = arith.addi %5, %35 : vector<32x1xi32>
    %c0_i32_13 = arith.constant 0 : i32
    %37 = vector.broadcast %c0_i32_13 : i32 to vector<32x1xi32>
    %38 = arith.cmpi sge, %36, %37 : vector<32x1xi32>
    %c1_i32_14 = arith.constant 1 : i32
    %39 = vector.broadcast %c1_i32_14 : i32 to vector<32x1xi32>
    %40 = arith.addi %5, %39 : vector<32x1xi32>
    %c15_i32_15 = arith.constant 15 : i32
    %41 = vector.broadcast %c15_i32_15 : i32 to vector<32x1xi32>
    %42 = arith.cmpi sle, %40, %41 : vector<32x1xi32>
    %43 = arith.andi %38, %42 : vector<32x1xi1>
    %cst_16 = arith.constant 0.000000e+00 : f32
    %44 = vector.shape_cast %43 : vector<32x1xi1> to vector<32x1xi1>
    %45 = vector.broadcast %44 : vector<32x1xi1> to vector<32x4xi1>
    %46 = vector.broadcast %cst_16 : f32 to vector<32x4xf32>
    %47 = arith.select %45, %34, %46 : vector<32x4xi1>, vector<32x4xf32>
    %48 = tpu.concatenate %33, %12, %47 in 1 : vector<32x4xf32>, vector<32x4xf32>, vector<32x4xf32> -> vector<32x12xf32>
    %cst_17 = arith.constant dense<0.000000e+00> : vector<32x2xf32>
    %49 = tpu.matmul %48, %18, %cst_17 {dimension_numbers = #tpu.dot_dimension_numbers<[1], [0], [0], [1], [0, 0, 1, 1], [], []>} : vector<32x12xf32>, vector<12x2xf32>, vector<32x2xf32> -> vector<32x2xf32>
    %50 = vector.broadcast %19 : vector<1x2xf32> to vector<32x2xf32>
    %51 = arith.addf %49, %50 : vector<32x2xf32>
    %cst_18 = arith.constant 0.000000e+00 : f32
    %52 = vector.broadcast %cst_18 : f32 to vector<32x2xf32>
    %53 = arith.maximumf %51, %52 : vector<32x2xf32>
    %c0_19 = arith.constant 0 : index
    %c14 = arith.constant 14 : index
    %54 = vector.load %arg2[%c0_19, %c14] : memref<72x137xf32, #tpu.memory_space<vmem>>, vector<6x4xf32>
    %c0_20 = arith.constant 0 : index
    %c14_21 = arith.constant 14 : index
    %55 = vector.load %arg3[%c0_20, %c14_21] : memref<1x137xf32, #tpu.memory_space<vmem>>, vector<1x4xf32>
    %c1_i32_22 = arith.constant 1 : i32
    %56 = tpu.dynamic_rotate %53 by %c1_i32_22 dim 0 : vector<32x2xf32>, i32 -> vector<32x2xf32>
    %c-1_i32_23 = arith.constant -1 : i32
    %57 = vector.broadcast %c-1_i32_23 : i32 to vector<32x1xi32>
    %58 = arith.addi %5, %57 : vector<32x1xi32>
    %c0_i32_24 = arith.constant 0 : i32
    %59 = vector.broadcast %c0_i32_24 : i32 to vector<32x1xi32>
    %60 = arith.cmpi sge, %58, %59 : vector<32x1xi32>
    %c-1_i32_25 = arith.constant -1 : i32
    %61 = vector.broadcast %c-1_i32_25 : i32 to vector<32x1xi32>
    %62 = arith.addi %5, %61 : vector<32x1xi32>
    %c15_i32_26 = arith.constant 15 : i32
    %63 = vector.broadcast %c15_i32_26 : i32 to vector<32x1xi32>
    %64 = arith.cmpi sle, %62, %63 : vector<32x1xi32>
    %65 = arith.andi %60, %64 : vector<32x1xi1>
    %cst_27 = arith.constant 0.000000e+00 : f32
    %66 = vector.shape_cast %65 : vector<32x1xi1> to vector<32x1xi1>
    %67 = vector.broadcast %66 : vector<32x1xi1> to vector<32x2xi1>
    %68 = vector.broadcast %cst_27 : f32 to vector<32x2xf32>
    %69 = arith.select %67, %56, %68 : vector<32x2xi1>, vector<32x2xf32>
    %c31_i32_28 = arith.constant 31 : i32
    %70 = tpu.dynamic_rotate %53 by %c31_i32_28 dim 0 : vector<32x2xf32>, i32 -> vector<32x2xf32>
    %c1_i32_29 = arith.constant 1 : i32
    %71 = vector.broadcast %c1_i32_29 : i32 to vector<32x1xi32>
    %72 = arith.addi %5, %71 : vector<32x1xi32>
    %c0_i32_30 = arith.constant 0 : i32
    %73 = vector.broadcast %c0_i32_30 : i32 to vector<32x1xi32>
    %74 = arith.cmpi sge, %72, %73 : vector<32x1xi32>
    %c1_i32_31 = arith.constant 1 : i32
    %75 = vector.broadcast %c1_i32_31 : i32 to vector<32x1xi32>
    %76 = arith.addi %5, %75 : vector<32x1xi32>
    %c15_i32_32 = arith.constant 15 : i32
    %77 = vector.broadcast %c15_i32_32 : i32 to vector<32x1xi32>
    %78 = arith.cmpi sle, %76, %77 : vector<32x1xi32>
    %79 = arith.andi %74, %78 : vector<32x1xi1>
    %cst_33 = arith.constant 0.000000e+00 : f32
    %80 = vector.shape_cast %79 : vector<32x1xi1> to vector<32x1xi1>
    %81 = vector.broadcast %80 : vector<32x1xi1> to vector<32x2xi1>
    %82 = vector.broadcast %cst_33 : f32 to vector<32x2xf32>
    %83 = arith.select %81, %70, %82 : vector<32x2xi1>, vector<32x2xf32>
    %84 = tpu.concatenate %69, %53, %83 in 1 : vector<32x2xf32>, vector<32x2xf32>, vector<32x2xf32> -> vector<32x6xf32>
    %cst_34 = arith.constant dense<0.000000e+00> : vector<32x4xf32>
    %85 = tpu.matmul %84, %54, %cst_34 {dimension_numbers = #tpu.dot_dimension_numbers<[1], [0], [0], [1], [0, 0, 1, 1], [], []>} : vector<32x6xf32>, vector<6x4xf32>, vector<32x4xf32> -> vector<32x4xf32>
    %86 = vector.broadcast %55 : vector<1x4xf32> to vector<32x4xf32>
    %87 = arith.addf %85, %86 : vector<32x4xf32>
    %cst_35 = arith.constant 0.000000e+00 : f32
    %88 = vector.broadcast %cst_35 : f32 to vector<32x4xf32>
    %89 = arith.maximumf %87, %88 : vector<32x4xf32>
    %c0_36 = arith.constant 0 : index
    %c18 = arith.constant 18 : index
    %90 = vector.load %arg2[%c0_36, %c18] : memref<72x137xf32, #tpu.memory_space<vmem>>, vector<12x6xf32>
    %c0_37 = arith.constant 0 : index
    %c18_38 = arith.constant 18 : index
    %91 = vector.load %arg3[%c0_37, %c18_38] : memref<1x137xf32, #tpu.memory_space<vmem>>, vector<1x6xf32>
    %c1_i32_39 = arith.constant 1 : i32
    %92 = tpu.dynamic_rotate %89 by %c1_i32_39 dim 0 : vector<32x4xf32>, i32 -> vector<32x4xf32>
    %c-1_i32_40 = arith.constant -1 : i32
    %93 = vector.broadcast %c-1_i32_40 : i32 to vector<32x1xi32>
    %94 = arith.addi %5, %93 : vector<32x1xi32>
    %c0_i32_41 = arith.constant 0 : i32
    %95 = vector.broadcast %c0_i32_41 : i32 to vector<32x1xi32>
    %96 = arith.cmpi sge, %94, %95 : vector<32x1xi32>
    %c-1_i32_42 = arith.constant -1 : i32
    %97 = vector.broadcast %c-1_i32_42 : i32 to vector<32x1xi32>
    %98 = arith.addi %5, %97 : vector<32x1xi32>
    %c15_i32_43 = arith.constant 15 : i32
    %99 = vector.broadcast %c15_i32_43 : i32 to vector<32x1xi32>
    %100 = arith.cmpi sle, %98, %99 : vector<32x1xi32>
    %101 = arith.andi %96, %100 : vector<32x1xi1>
    %cst_44 = arith.constant 0.000000e+00 : f32
    %102 = vector.shape_cast %101 : vector<32x1xi1> to vector<32x1xi1>
    %103 = vector.broadcast %102 : vector<32x1xi1> to vector<32x4xi1>
    %104 = vector.broadcast %cst_44 : f32 to vector<32x4xf32>
    %105 = arith.select %103, %92, %104 : vector<32x4xi1>, vector<32x4xf32>
    %c31_i32_45 = arith.constant 31 : i32
    %106 = tpu.dynamic_rotate %89 by %c31_i32_45 dim 0 : vector<32x4xf32>, i32 -> vector<32x4xf32>
    %c1_i32_46 = arith.constant 1 : i32
    %107 = vector.broadcast %c1_i32_46 : i32 to vector<32x1xi32>
    %108 = arith.addi %5, %107 : vector<32x1xi32>
    %c0_i32_47 = arith.constant 0 : i32
    %109 = vector.broadcast %c0_i32_47 : i32 to vector<32x1xi32>
    %110 = arith.cmpi sge, %108, %109 : vector<32x1xi32>
    %c1_i32_48 = arith.constant 1 : i32
    %111 = vector.broadcast %c1_i32_48 : i32 to vector<32x1xi32>
    %112 = arith.addi %5, %111 : vector<32x1xi32>
    %c15_i32_49 = arith.constant 15 : i32
    %113 = vector.broadcast %c15_i32_49 : i32 to vector<32x1xi32>
    %114 = arith.cmpi sle, %112, %113 : vector<32x1xi32>
    %115 = arith.andi %110, %114 : vector<32x1xi1>
    %cst_50 = arith.constant 0.000000e+00 : f32
    %116 = vector.shape_cast %115 : vector<32x1xi1> to vector<32x1xi1>
    %117 = vector.broadcast %116 : vector<32x1xi1> to vector<32x4xi1>
    %118 = vector.broadcast %cst_50 : f32 to vector<32x4xf32>
    %119 = arith.select %117, %106, %118 : vector<32x4xi1>, vector<32x4xf32>
    %120 = tpu.concatenate %105, %89, %119 in 1 : vector<32x4xf32>, vector<32x4xf32>, vector<32x4xf32> -> vector<32x12xf32>
    %cst_51 = arith.constant dense<0.000000e+00> : vector<32x6xf32>
    %121 = tpu.matmul %120, %90, %cst_51 {dimension_numbers = #tpu.dot_dimension_numbers<[1], [0], [0], [1], [0, 0, 1, 1], [], []>} : vector<32x12xf32>, vector<12x6xf32>, vector<32x6xf32> -> vector<32x6xf32>
    %122 = vector.broadcast %91 : vector<1x6xf32> to vector<32x6xf32>
    %123 = arith.addf %121, %122 : vector<32x6xf32>
    %cst_52 = arith.constant 0.000000e+00 : f32
    %124 = vector.broadcast %cst_52 : f32 to vector<32x6xf32>
    %125 = arith.maximumf %123, %124 : vector<32x6xf32>
    %126 = tpu.concatenate %53, %89, %125 in 1 : vector<32x2xf32>, vector<32x4xf32>, vector<32x6xf32> -> vector<32x12xf32>
    %127 = arith.addf %17, %126 : vector<32x12xf32>
    %cst_53 = arith.constant 0.000000e+00 : f32
    %128 = vector.broadcast %cst_53 : f32 to vector<32x12xf32>
    %129 = arith.maximumf %127, %128 : vector<32x12xf32>
    %c0_54 = arith.constant 0 : index
    %c24 = arith.constant 24 : index
    %130 = vector.load %arg2[%c0_54, %c24] : memref<72x137xf32, #tpu.memory_space<vmem>>, vector<12x12xf32>
    %c0_55 = arith.constant 0 : index
    %c24_56 = arith.constant 24 : index
    %131 = vector.load %arg3[%c0_55, %c24_56] : memref<1x137xf32, #tpu.memory_space<vmem>>, vector<1x12xf32>
    %cst_57 = arith.constant dense<0.000000e+00> : vector<32x12xf32>
    %132 = tpu.matmul %129, %130, %cst_57 {dimension_numbers = #tpu.dot_dimension_numbers<[1], [0], [0], [1], [0, 0, 1, 1], [], []>} : vector<32x12xf32>, vector<12x12xf32>, vector<32x12xf32> -> vector<32x12xf32>
    %133 = vector.broadcast %131 : vector<1x12xf32> to vector<32x12xf32>
    %134 = arith.addf %132, %133 : vector<32x12xf32>
    %c0_58 = arith.constant 0 : index
    %c36 = arith.constant 36 : index
    %135 = vector.load %arg2[%c0_58, %c36] : memref<72x137xf32, #tpu.memory_space<vmem>>, vector<36x12xf32>
    %c0_59 = arith.constant 0 : index
    %c36_60 = arith.constant 36 : index
    %136 = vector.load %arg3[%c0_59, %c36_60] : memref<1x137xf32, #tpu.memory_space<vmem>>, vector<1x12xf32>
    %c1_i32_61 = arith.constant 1 : i32
    %137 = tpu.dynamic_rotate %129 by %c1_i32_61 dim 0 : vector<32x12xf32>, i32 -> vector<32x12xf32>
    %c-1_i32_62 = arith.constant -1 : i32
    %138 = vector.broadcast %c-1_i32_62 : i32 to vector<32x1xi32>
    %139 = arith.addi %5, %138 : vector<32x1xi32>
    %c0_i32_63 = arith.constant 0 : i32
    %140 = vector.broadcast %c0_i32_63 : i32 to vector<32x1xi32>
    %141 = arith.cmpi sge, %139, %140 : vector<32x1xi32>
    %c-1_i32_64 = arith.constant -1 : i32
    %142 = vector.broadcast %c-1_i32_64 : i32 to vector<32x1xi32>
    %143 = arith.addi %5, %142 : vector<32x1xi32>
    %c15_i32_65 = arith.constant 15 : i32
    %144 = vector.broadcast %c15_i32_65 : i32 to vector<32x1xi32>
    %145 = arith.cmpi sle, %143, %144 : vector<32x1xi32>
    %146 = arith.andi %141, %145 : vector<32x1xi1>
    %cst_66 = arith.constant 0.000000e+00 : f32
    %147 = vector.shape_cast %146 : vector<32x1xi1> to vector<32x1xi1>
    %148 = vector.broadcast %147 : vector<32x1xi1> to vector<32x12xi1>
    %149 = vector.broadcast %cst_66 : f32 to vector<32x12xf32>
    %150 = arith.select %148, %137, %149 : vector<32x12xi1>, vector<32x12xf32>
    %c31_i32_67 = arith.constant 31 : i32
    %151 = tpu.dynamic_rotate %129 by %c31_i32_67 dim 0 : vector<32x12xf32>, i32 -> vector<32x12xf32>
    %c1_i32_68 = arith.constant 1 : i32
    %152 = vector.broadcast %c1_i32_68 : i32 to vector<32x1xi32>
    %153 = arith.addi %5, %152 : vector<32x1xi32>
    %c0_i32_69 = arith.constant 0 : i32
    %154 = vector.broadcast %c0_i32_69 : i32 to vector<32x1xi32>
    %155 = arith.cmpi sge, %153, %154 : vector<32x1xi32>
    %c1_i32_70 = arith.constant 1 : i32
    %156 = vector.broadcast %c1_i32_70 : i32 to vector<32x1xi32>
    %157 = arith.addi %5, %156 : vector<32x1xi32>
    %c15_i32_71 = arith.constant 15 : i32
    %158 = vector.broadcast %c15_i32_71 : i32 to vector<32x1xi32>
    %159 = arith.cmpi sle, %157, %158 : vector<32x1xi32>
    %160 = arith.andi %155, %159 : vector<32x1xi1>
    %cst_72 = arith.constant 0.000000e+00 : f32
    %161 = vector.shape_cast %160 : vector<32x1xi1> to vector<32x1xi1>
    %162 = vector.broadcast %161 : vector<32x1xi1> to vector<32x12xi1>
    %163 = vector.broadcast %cst_72 : f32 to vector<32x12xf32>
    %164 = arith.select %162, %151, %163 : vector<32x12xi1>, vector<32x12xf32>
    %165 = tpu.concatenate %150, %129, %164 in 1 : vector<32x12xf32>, vector<32x12xf32>, vector<32x12xf32> -> vector<32x36xf32>
    %cst_73 = arith.constant dense<0.000000e+00> : vector<32x12xf32>
    %166 = tpu.matmul %165, %135, %cst_73 {dimension_numbers = #tpu.dot_dimension_numbers<[1], [0], [0], [1], [0, 0, 1, 1], [], []>} : vector<32x36xf32>, vector<36x12xf32>, vector<32x12xf32> -> vector<32x12xf32>
    %167 = vector.broadcast %136 : vector<1x12xf32> to vector<32x12xf32>
    %168 = arith.addf %166, %167 : vector<32x12xf32>
    %cst_74 = arith.constant 0.000000e+00 : f32
    %169 = vector.broadcast %cst_74 : f32 to vector<32x12xf32>
    %170 = arith.maximumf %168, %169 : vector<32x12xf32>
    %171 = arith.addf %170, %134 : vector<32x12xf32>
    %cst_75 = arith.constant 0.000000e+00 : f32
    %172 = vector.broadcast %cst_75 : f32 to vector<32x12xf32>
    %173 = arith.maximumf %171, %172 : vector<32x12xf32>
    %c0_76 = arith.constant 0 : index
    %c0_77 = arith.constant 0 : index
    %174 = vector.load %arg5[%c0_76, %c0_77] : memref<32x12xf32, #tpu.memory_space<vmem>>, vector<32x12xf32>
    tpu.vector_store %arg5[%c0_76, %c0_77], %129 {strides = array<i32>} : memref<32x12xf32, #tpu.memory_space<vmem>>, vector<32x12xf32>,
    %c0_78 = arith.constant 0 : index
    %c0_79 = arith.constant 0 : index
    %175 = tpu.strided_load %arg5[%c0_78, %c0_79] {strides = array<i32: 2, 1>} : memref<32x12xf32, #tpu.memory_space<vmem>>, vector<16x12xf32>
    %c1 = arith.constant 1 : index
    %c0_80 = arith.constant 0 : index
    %176 = tpu.strided_load %arg5[%c1, %c0_80] {strides = array<i32: 2, 1>} : memref<32x12xf32, #tpu.memory_space<vmem>>, vector<16x12xf32>
    %177 = arith.maximumf %175, %176 : vector<16x12xf32>
    %c0_81 = arith.constant 0 : index
    %c48 = arith.constant 48 : index
    %178 = vector.load %arg2[%c0_81, %c48] : memref<72x137xf32, #tpu.memory_space<vmem>>, vector<12x25xf32>
    %c0_82 = arith.constant 0 : index
    %c48_83 = arith.constant 48 : index
    %179 = vector.load %arg3[%c0_82, %c48_83] : memref<1x137xf32, #tpu.memory_space<vmem>>, vector<1x25xf32>
    %cst_84 = arith.constant dense<0.000000e+00> : vector<16x25xf32>
    %180 = tpu.matmul %177, %178, %cst_84 {dimension_numbers = #tpu.dot_dimension_numbers<[1], [0], [0], [1], [0, 0, 1, 1], [], []>} : vector<16x12xf32>, vector<12x25xf32>, vector<16x25xf32> -> vector<16x25xf32>
    %181 = vector.broadcast %179 : vector<1x25xf32> to vector<16x25xf32>
    %182 = arith.addf %180, %181 : vector<16x25xf32>
    %c0_85 = arith.constant 0 : index
    %c73 = arith.constant 73 : index
    %183 = vector.load %arg2[%c0_85, %c73] : memref<72x137xf32, #tpu.memory_space<vmem>>, vector<36x4xf32>
    %c0_86 = arith.constant 0 : index
    %c73_87 = arith.constant 73 : index
    %184 = vector.load %arg3[%c0_86, %c73_87] : memref<1x137xf32, #tpu.memory_space<vmem>>, vector<1x4xf32>
    %c1_i32_88 = arith.constant 1 : i32
    %185 = tpu.dynamic_rotate %177 by %c1_i32_88 dim 0 : vector<16x12xf32>, i32 -> vector<16x12xf32>
    %c-1_i32_89 = arith.constant -1 : i32
    %186 = vector.broadcast %c-1_i32_89 : i32 to vector<16x1xi32>
    %187 = arith.addi %11, %186 : vector<16x1xi32>
    %c0_i32_90 = arith.constant 0 : i32
    %188 = vector.broadcast %c0_i32_90 : i32 to vector<16x1xi32>
    %189 = arith.cmpi sge, %187, %188 : vector<16x1xi32>
    %c-1_i32_91 = arith.constant -1 : i32
    %190 = vector.broadcast %c-1_i32_91 : i32 to vector<16x1xi32>
    %191 = arith.addi %11, %190 : vector<16x1xi32>
    %c7_i32 = arith.constant 7 : i32
    %192 = vector.broadcast %c7_i32 : i32 to vector<16x1xi32>
    %193 = arith.cmpi sle, %191, %192 : vector<16x1xi32>
    %194 = arith.andi %189, %193 : vector<16x1xi1>
    %cst_92 = arith.constant 0.000000e+00 : f32
    %195 = vector.shape_cast %194 : vector<16x1xi1> to vector<16x1xi1>
    %196 = vector.broadcast %195 : vector<16x1xi1> to vector<16x12xi1>
    %197 = vector.broadcast %cst_92 : f32 to vector<16x12xf32>
    %198 = arith.select %196, %185, %197 : vector<16x12xi1>, vector<16x12xf32>
    %c15_i32_93 = arith.constant 15 : i32
    %199 = tpu.dynamic_rotate %177 by %c15_i32_93 dim 0 : vector<16x12xf32>, i32 -> vector<16x12xf32>
    %c1_i32_94 = arith.constant 1 : i32
    %200 = vector.broadcast %c1_i32_94 : i32 to vector<16x1xi32>
    %201 = arith.addi %11, %200 : vector<16x1xi32>
    %c0_i32_95 = arith.constant 0 : i32
    %202 = vector.broadcast %c0_i32_95 : i32 to vector<16x1xi32>
    %203 = arith.cmpi sge, %201, %202 : vector<16x1xi32>
    %c1_i32_96 = arith.constant 1 : i32
    %204 = vector.broadcast %c1_i32_96 : i32 to vector<16x1xi32>
    %205 = arith.addi %11, %204 : vector<16x1xi32>
    %c7_i32_97 = arith.constant 7 : i32
    %206 = vector.broadcast %c7_i32_97 : i32 to vector<16x1xi32>
    %207 = arith.cmpi sle, %205, %206 : vector<16x1xi32>
    %208 = arith.andi %203, %207 : vector<16x1xi1>
    %cst_98 = arith.constant 0.000000e+00 : f32
    %209 = vector.shape_cast %208 : vector<16x1xi1> to vector<16x1xi1>
    %210 = vector.broadcast %209 : vector<16x1xi1> to vector<16x12xi1>
    %211 = vector.broadcast %cst_98 : f32 to vector<16x12xf32>
    %212 = arith.select %210, %199, %211 : vector<16x12xi1>, vector<16x12xf32>
    %213 = tpu.concatenate %198, %177, %212 in 1 : vector<16x12xf32>, vector<16x12xf32>, vector<16x12xf32> -> vector<16x36xf32>
    %cst_99 = arith.constant dense<0.000000e+00> : vector<16x4xf32>
    %214 = tpu.matmul %213, %183, %cst_99 {dimension_numbers = #tpu.dot_dimension_numbers<[1], [0], [0], [1], [0, 0, 1, 1], [], []>} : vector<16x36xf32>, vector<36x4xf32>, vector<16x4xf32> -> vector<16x4xf32>
    %215 = vector.broadcast %184 : vector<1x4xf32> to vector<16x4xf32>
    %216 = arith.addf %214, %215 : vector<16x4xf32>
    %cst_100 = arith.constant 0.000000e+00 : f32
    %217 = vector.broadcast %cst_100 : f32 to vector<16x4xf32>
    %218 = arith.maximumf %216, %217 : vector<16x4xf32>
    %c0_101 = arith.constant 0 : index
    %c77 = arith.constant 77 : index
    %219 = vector.load %arg2[%c0_101, %c77] : memref<72x137xf32, #tpu.memory_space<vmem>>, vector<12x8xf32>
    %c0_102 = arith.constant 0 : index
    %c77_103 = arith.constant 77 : index
    %220 = vector.load %arg3[%c0_102, %c77_103] : memref<1x137xf32, #tpu.memory_space<vmem>>, vector<1x8xf32>
    %c1_i32_104 = arith.constant 1 : i32
    %221 = tpu.dynamic_rotate %218 by %c1_i32_104 dim 0 : vector<16x4xf32>, i32 -> vector<16x4xf32>
    %c-1_i32_105 = arith.constant -1 : i32
    %222 = vector.broadcast %c-1_i32_105 : i32 to vector<16x1xi32>
    %223 = arith.addi %11, %222 : vector<16x1xi32>
    %c0_i32_106 = arith.constant 0 : i32
    %224 = vector.broadcast %c0_i32_106 : i32 to vector<16x1xi32>
    %225 = arith.cmpi sge, %223, %224 : vector<16x1xi32>
    %c-1_i32_107 = arith.constant -1 : i32
    %226 = vector.broadcast %c-1_i32_107 : i32 to vector<16x1xi32>
    %227 = arith.addi %11, %226 : vector<16x1xi32>
    %c7_i32_108 = arith.constant 7 : i32
    %228 = vector.broadcast %c7_i32_108 : i32 to vector<16x1xi32>
    %229 = arith.cmpi sle, %227, %228 : vector<16x1xi32>
    %230 = arith.andi %225, %229 : vector<16x1xi1>
    %cst_109 = arith.constant 0.000000e+00 : f32
    %231 = vector.shape_cast %230 : vector<16x1xi1> to vector<16x1xi1>
    %232 = vector.broadcast %231 : vector<16x1xi1> to vector<16x4xi1>
    %233 = vector.broadcast %cst_109 : f32 to vector<16x4xf32>
    %234 = arith.select %232, %221, %233 : vector<16x4xi1>, vector<16x4xf32>
    %c15_i32_110 = arith.constant 15 : i32
    %235 = tpu.dynamic_rotate %218 by %c15_i32_110 dim 0 : vector<16x4xf32>, i32 -> vector<16x4xf32>
    %c1_i32_111 = arith.constant 1 : i32
    %236 = vector.broadcast %c1_i32_111 : i32 to vector<16x1xi32>
    %237 = arith.addi %11, %236 : vector<16x1xi32>
    %c0_i32_112 = arith.constant 0 : i32
    %238 = vector.broadcast %c0_i32_112 : i32 to vector<16x1xi32>
    %239 = arith.cmpi sge, %237, %238 : vector<16x1xi32>
    %c1_i32_113 = arith.constant 1 : i32
    %240 = vector.broadcast %c1_i32_113 : i32 to vector<16x1xi32>
    %241 = arith.addi %11, %240 : vector<16x1xi32>
    %c7_i32_114 = arith.constant 7 : i32
    %242 = vector.broadcast %c7_i32_114 : i32 to vector<16x1xi32>
    %243 = arith.cmpi sle, %241, %242 : vector<16x1xi32>
    %244 = arith.andi %239, %243 : vector<16x1xi1>
    %cst_115 = arith.constant 0.000000e+00 : f32
    %245 = vector.shape_cast %244 : vector<16x1xi1> to vector<16x1xi1>
    %246 = vector.broadcast %245 : vector<16x1xi1> to vector<16x4xi1>
    %247 = vector.broadcast %cst_115 : f32 to vector<16x4xf32>
    %248 = arith.select %246, %235, %247 : vector<16x4xi1>, vector<16x4xf32>
    %249 = tpu.concatenate %234, %218, %248 in 1 : vector<16x4xf32>, vector<16x4xf32>, vector<16x4xf32> -> vector<16x12xf32>
    %cst_116 = arith.constant dense<0.000000e+00> : vector<16x8xf32>
    %250 = tpu.matmul %249, %219, %cst_116 {dimension_numbers = #tpu.dot_dimension_numbers<[1], [0], [0], [1], [0, 0, 1, 1], [], []>} : vector<16x12xf32>, vector<12x8xf32>, vector<16x8xf32> -> vector<16x8xf32>
    %251 = vector.broadcast %220 : vector<1x8xf32> to vector<16x8xf32>
    %252 = arith.addf %250, %251 : vector<16x8xf32>
    %cst_117 = arith.constant 0.000000e+00 : f32
    %253 = vector.broadcast %cst_117 : f32 to vector<16x8xf32>
    %254 = arith.maximumf %252, %253 : vector<16x8xf32>
    %c0_118 = arith.constant 0 : index
    %c85 = arith.constant 85 : index
    %255 = vector.load %arg2[%c0_118, %c85] : memref<72x137xf32, #tpu.memory_space<vmem>>, vector<24x13xf32>
    %c0_119 = arith.constant 0 : index
    %c85_120 = arith.constant 85 : index
    %256 = vector.load %arg3[%c0_119, %c85_120] : memref<1x137xf32, #tpu.memory_space<vmem>>, vector<1x13xf32>
    %c1_i32_121 = arith.constant 1 : i32
    %257 = tpu.dynamic_rotate %254 by %c1_i32_121 dim 0 : vector<16x8xf32>, i32 -> vector<16x8xf32>
    %c-1_i32_122 = arith.constant -1 : i32
    %258 = vector.broadcast %c-1_i32_122 : i32 to vector<16x1xi32>
    %259 = arith.addi %11, %258 : vector<16x1xi32>
    %c0_i32_123 = arith.constant 0 : i32
    %260 = vector.broadcast %c0_i32_123 : i32 to vector<16x1xi32>
    %261 = arith.cmpi sge, %259, %260 : vector<16x1xi32>
    %c-1_i32_124 = arith.constant -1 : i32
    %262 = vector.broadcast %c-1_i32_124 : i32 to vector<16x1xi32>
    %263 = arith.addi %11, %262 : vector<16x1xi32>
    %c7_i32_125 = arith.constant 7 : i32
    %264 = vector.broadcast %c7_i32_125 : i32 to vector<16x1xi32>
    %265 = arith.cmpi sle, %263, %264 : vector<16x1xi32>
    %266 = arith.andi %261, %265 : vector<16x1xi1>
    %cst_126 = arith.constant 0.000000e+00 : f32
    %267 = vector.shape_cast %266 : vector<16x1xi1> to vector<16x1xi1>
    %268 = vector.broadcast %267 : vector<16x1xi1> to vector<16x8xi1>
    %269 = vector.broadcast %cst_126 : f32 to vector<16x8xf32>
    %270 = arith.select %268, %257, %269 : vector<16x8xi1>, vector<16x8xf32>
    %c15_i32_127 = arith.constant 15 : i32
    %271 = tpu.dynamic_rotate %254 by %c15_i32_127 dim 0 : vector<16x8xf32>, i32 -> vector<16x8xf32>
    %c1_i32_128 = arith.constant 1 : i32
    %272 = vector.broadcast %c1_i32_128 : i32 to vector<16x1xi32>
    %273 = arith.addi %11, %272 : vector<16x1xi32>
    %c0_i32_129 = arith.constant 0 : i32
    %274 = vector.broadcast %c0_i32_129 : i32 to vector<16x1xi32>
    %275 = arith.cmpi sge, %273, %274 : vector<16x1xi32>
    %c1_i32_130 = arith.constant 1 : i32
    %276 = vector.broadcast %c1_i32_130 : i32 to vector<16x1xi32>
    %277 = arith.addi %11, %276 : vector<16x1xi32>
    %c7_i32_131 = arith.constant 7 : i32
    %278 = vector.broadcast %c7_i32_131 : i32 to vector<16x1xi32>
    %279 = arith.cmpi sle, %277, %278 : vector<16x1xi32>
    %280 = arith.andi %275, %279 : vector<16x1xi1>
    %cst_132 = arith.constant 0.000000e+00 : f32
    %281 = vector.shape_cast %280 : vector<16x1xi1> to vector<16x1xi1>
    %282 = vector.broadcast %281 : vector<16x1xi1> to vector<16x8xi1>
    %283 = vector.broadcast %cst_132 : f32 to vector<16x8xf32>
    %284 = arith.select %282, %271, %283 : vector<16x8xi1>, vector<16x8xf32>
    %285 = tpu.concatenate %270, %254, %284 in 1 : vector<16x8xf32>, vector<16x8xf32>, vector<16x8xf32> -> vector<16x24xf32>
    %cst_133 = arith.constant dense<0.000000e+00> : vector<16x13xf32>
    %286 = tpu.matmul %285, %255, %cst_133 {dimension_numbers = #tpu.dot_dimension_numbers<[1], [0], [0], [1], [0, 0, 1, 1], [], []>} : vector<16x24xf32>, vector<24x13xf32>, vector<16x13xf32> -> vector<16x13xf32>
    %287 = vector.broadcast %256 : vector<1x13xf32> to vector<16x13xf32>
    %288 = arith.addf %286, %287 : vector<16x13xf32>
    %cst_134 = arith.constant 0.000000e+00 : f32
    %289 = vector.broadcast %cst_134 : f32 to vector<16x13xf32>
    %290 = arith.maximumf %288, %289 : vector<16x13xf32>
    %291 = tpu.concatenate %218, %254, %290 in 1 : vector<16x4xf32>, vector<16x8xf32>, vector<16x13xf32> -> vector<16x25xf32>
    %292 = arith.addf %182, %291 : vector<16x25xf32>
    %cst_135 = arith.constant 0.000000e+00 : f32
    %293 = vector.broadcast %cst_135 : f32 to vector<16x25xf32>
    %294 = arith.maximumf %292, %293 : vector<16x25xf32>
    %c0_136 = arith.constant 0 : index
    %c98 = arith.constant 98 : index
    %295 = vector.load %arg2[%c0_136, %c98] : memref<72x137xf32, #tpu.memory_space<vmem>>, vector<50x12xf32>
    %c0_137 = arith.constant 0 : index
    %c98_138 = arith.constant 98 : index
    %296 = vector.load %arg3[%c0_137, %c98_138] : memref<1x137xf32, #tpu.memory_space<vmem>>, vector<1x12xf32>
    %297 = vector.extract_strided_slice %295 {offsets = [0, 0], sizes = [25, 12], strides = [1, 1]} : vector<50x12xf32> to vector<25x12xf32>
    %cst_139 = arith.constant dense<0.000000e+00> : vector<16x12xf32>
    %298 = tpu.matmul %294, %297, %cst_139 {dimension_numbers = #tpu.dot_dimension_numbers<[1], [0], [0], [1], [0, 0, 1, 1], [], []>} : vector<16x25xf32>, vector<25x12xf32>, vector<16x12xf32> -> vector<16x12xf32>
    %c0_140 = arith.constant 0 : index
    %c0_141 = arith.constant 0 : index
    %299 = tpu.strided_load %arg5[%c0_140, %c0_141] {strides = array<i32: 2, 1>} : memref<32x12xf32, #tpu.memory_space<vmem>>, vector<16x12xf32>
    tpu.strided_store %arg5[%c0_140, %c0_141], %298 {strides = array<i32: 2, 1>} : memref<32x12xf32, #tpu.memory_space<vmem>>, vector<16x12xf32>
    %300 = vector.extract_strided_slice %295 {offsets = [25, 0], sizes = [25, 12], strides = [1, 1]} : vector<50x12xf32> to vector<25x12xf32>
    %cst_142 = arith.constant dense<0.000000e+00> : vector<16x12xf32>
    %301 = tpu.matmul %294, %300, %cst_142 {dimension_numbers = #tpu.dot_dimension_numbers<[1], [0], [0], [1], [0, 0, 1, 1], [], []>} : vector<16x25xf32>, vector<25x12xf32>, vector<16x12xf32> -> vector<16x12xf32>
    %c1_143 = arith.constant 1 : index
    %c0_144 = arith.constant 0 : index
    %302 = tpu.strided_load %arg5[%c1_143, %c0_144] {strides = array<i32: 2, 1>} : memref<32x12xf32, #tpu.memory_space<vmem>>, vector<16x12xf32>
    tpu.strided_store %arg5[%c1_143, %c0_144], %301 {strides = array<i32: 2, 1>} : memref<32x12xf32, #tpu.memory_space<vmem>>, vector<16x12xf32>
    %c0_145 = arith.constant 0 : index
    %c0_146 = arith.constant 0 : index
    %303 = vector.load %arg5[%c0_145, %c0_146] : memref<32x12xf32, #tpu.memory_space<vmem>>, vector<32x12xf32>
    %304 = vector.broadcast %296 : vector<1x12xf32> to vector<32x12xf32>
    %305 = arith.addf %303, %304 : vector<32x12xf32>
    %306 = tpu.concatenate %305, %173 in 1 : vector<32x12xf32>, vector<32x12xf32> -> vector<32x24xf32>
    %c0_147 = arith.constant 0 : index
    %c110 = arith.constant 110 : index
    %307 = vector.load %arg2[%c0_147, %c110] : memref<72x137xf32, #tpu.memory_space<vmem>>, vector<24x12xf32>
    %c0_148 = arith.constant 0 : index
    %c110_149 = arith.constant 110 : index
    %308 = vector.load %arg3[%c0_148, %c110_149] : memref<1x137xf32, #tpu.memory_space<vmem>>, vector<1x12xf32>
    %cst_150 = arith.constant dense<0.000000e+00> : vector<32x12xf32>
    %309 = tpu.matmul %306, %307, %cst_150 {dimension_numbers = #tpu.dot_dimension_numbers<[1], [0], [0], [1], [0, 0, 1, 1], [], []>} : vector<32x24xf32>, vector<24x12xf32>, vector<32x12xf32> -> vector<32x12xf32>
    %310 = vector.broadcast %308 : vector<1x12xf32> to vector<32x12xf32>
    %311 = arith.addf %309, %310 : vector<32x12xf32>
    %c0_151 = arith.constant 0 : index
    %c122 = arith.constant 122 : index
    %312 = vector.load %arg2[%c0_151, %c122] : memref<72x137xf32, #tpu.memory_space<vmem>>, vector<72x2xf32>
    %c0_152 = arith.constant 0 : index
    %c122_153 = arith.constant 122 : index
    %313 = vector.load %arg3[%c0_152, %c122_153] : memref<1x137xf32, #tpu.memory_space<vmem>>, vector<1x2xf32>
    %c1_i32_154 = arith.constant 1 : i32
    %314 = tpu.dynamic_rotate %306 by %c1_i32_154 dim 0 : vector<32x24xf32>, i32 -> vector<32x24xf32>
    %c-1_i32_155 = arith.constant -1 : i32
    %315 = vector.broadcast %c-1_i32_155 : i32 to vector<32x1xi32>
    %316 = arith.addi %5, %315 : vector<32x1xi32>
    %c0_i32_156 = arith.constant 0 : i32
    %317 = vector.broadcast %c0_i32_156 : i32 to vector<32x1xi32>
    %318 = arith.cmpi sge, %316, %317 : vector<32x1xi32>
    %c-1_i32_157 = arith.constant -1 : i32
    %319 = vector.broadcast %c-1_i32_157 : i32 to vector<32x1xi32>
    %320 = arith.addi %5, %319 : vector<32x1xi32>
    %c15_i32_158 = arith.constant 15 : i32
    %321 = vector.broadcast %c15_i32_158 : i32 to vector<32x1xi32>
    %322 = arith.cmpi sle, %320, %321 : vector<32x1xi32>
    %323 = arith.andi %318, %322 : vector<32x1xi1>
    %cst_159 = arith.constant 0.000000e+00 : f32
    %324 = vector.shape_cast %323 : vector<32x1xi1> to vector<32x1xi1>
    %325 = vector.broadcast %324 : vector<32x1xi1> to vector<32x24xi1>
    %326 = vector.broadcast %cst_159 : f32 to vector<32x24xf32>
    %327 = arith.select %325, %314, %326 : vector<32x24xi1>, vector<32x24xf32>
    %c31_i32_160 = arith.constant 31 : i32
    %328 = tpu.dynamic_rotate %306 by %c31_i32_160 dim 0 : vector<32x24xf32>, i32 -> vector<32x24xf32>
    %c1_i32_161 = arith.constant 1 : i32
    %329 = vector.broadcast %c1_i32_161 : i32 to vector<32x1xi32>
    %330 = arith.addi %5, %329 : vector<32x1xi32>
    %c0_i32_162 = arith.constant 0 : i32
    %331 = vector.broadcast %c0_i32_162 : i32 to vector<32x1xi32>
    %332 = arith.cmpi sge, %330, %331 : vector<32x1xi32>
    %c1_i32_163 = arith.constant 1 : i32
    %333 = vector.broadcast %c1_i32_163 : i32 to vector<32x1xi32>
    %334 = arith.addi %5, %333 : vector<32x1xi32>
    %c15_i32_164 = arith.constant 15 : i32
    %335 = vector.broadcast %c15_i32_164 : i32 to vector<32x1xi32>
    %336 = arith.cmpi sle, %334, %335 : vector<32x1xi32>
    %337 = arith.andi %332, %336 : vector<32x1xi1>
    %cst_165 = arith.constant 0.000000e+00 : f32
    %338 = vector.shape_cast %337 : vector<32x1xi1> to vector<32x1xi1>
    %339 = vector.broadcast %338 : vector<32x1xi1> to vector<32x24xi1>
    %340 = vector.broadcast %cst_165 : f32 to vector<32x24xf32>
    %341 = arith.select %339, %328, %340 : vector<32x24xi1>, vector<32x24xf32>
    %342 = tpu.concatenate %327, %306, %341 in 1 : vector<32x24xf32>, vector<32x24xf32>, vector<32x24xf32> -> vector<32x72xf32>
    %cst_166 = arith.constant dense<0.000000e+00> : vector<32x2xf32>
    %343 = tpu.matmul %342, %312, %cst_166 {dimension_numbers = #tpu.dot_dimension_numbers<[1], [0], [0], [1], [0, 0, 1, 1], [], []>} : vector<32x72xf32>, vector<72x2xf32>, vector<32x2xf32> -> vector<32x2xf32>
    %344 = vector.broadcast %313 : vector<1x2xf32> to vector<32x2xf32>
    %345 = arith.addf %343, %344 : vector<32x2xf32>
    %cst_167 = arith.constant 0.000000e+00 : f32
    %346 = vector.broadcast %cst_167 : f32 to vector<32x2xf32>
    %347 = arith.maximumf %345, %346 : vector<32x2xf32>
    %c0_168 = arith.constant 0 : index
    %c124 = arith.constant 124 : index
    %348 = vector.load %arg2[%c0_168, %c124] : memref<72x137xf32, #tpu.memory_space<vmem>>, vector<6x4xf32>
    %c0_169 = arith.constant 0 : index
    %c124_170 = arith.constant 124 : index
    %349 = vector.load %arg3[%c0_169, %c124_170] : memref<1x137xf32, #tpu.memory_space<vmem>>, vector<1x4xf32>
    %c1_i32_171 = arith.constant 1 : i32
    %350 = tpu.dynamic_rotate %347 by %c1_i32_171 dim 0 : vector<32x2xf32>, i32 -> vector<32x2xf32>
    %c-1_i32_172 = arith.constant -1 : i32
    %351 = vector.broadcast %c-1_i32_172 : i32 to vector<32x1xi32>
    %352 = arith.addi %5, %351 : vector<32x1xi32>
    %c0_i32_173 = arith.constant 0 : i32
    %353 = vector.broadcast %c0_i32_173 : i32 to vector<32x1xi32>
    %354 = arith.cmpi sge, %352, %353 : vector<32x1xi32>
    %c-1_i32_174 = arith.constant -1 : i32
    %355 = vector.broadcast %c-1_i32_174 : i32 to vector<32x1xi32>
    %356 = arith.addi %5, %355 : vector<32x1xi32>
    %c15_i32_175 = arith.constant 15 : i32
    %357 = vector.broadcast %c15_i32_175 : i32 to vector<32x1xi32>
    %358 = arith.cmpi sle, %356, %357 : vector<32x1xi32>
    %359 = arith.andi %354, %358 : vector<32x1xi1>
    %cst_176 = arith.constant 0.000000e+00 : f32
    %360 = vector.shape_cast %359 : vector<32x1xi1> to vector<32x1xi1>
    %361 = vector.broadcast %360 : vector<32x1xi1> to vector<32x2xi1>
    %362 = vector.broadcast %cst_176 : f32 to vector<32x2xf32>
    %363 = arith.select %361, %350, %362 : vector<32x2xi1>, vector<32x2xf32>
    %c31_i32_177 = arith.constant 31 : i32
    %364 = tpu.dynamic_rotate %347 by %c31_i32_177 dim 0 : vector<32x2xf32>, i32 -> vector<32x2xf32>
    %c1_i32_178 = arith.constant 1 : i32
    %365 = vector.broadcast %c1_i32_178 : i32 to vector<32x1xi32>
    %366 = arith.addi %5, %365 : vector<32x1xi32>
    %c0_i32_179 = arith.constant 0 : i32
    %367 = vector.broadcast %c0_i32_179 : i32 to vector<32x1xi32>
    %368 = arith.cmpi sge, %366, %367 : vector<32x1xi32>
    %c1_i32_180 = arith.constant 1 : i32
    %369 = vector.broadcast %c1_i32_180 : i32 to vector<32x1xi32>
    %370 = arith.addi %5, %369 : vector<32x1xi32>
    %c15_i32_181 = arith.constant 15 : i32
    %371 = vector.broadcast %c15_i32_181 : i32 to vector<32x1xi32>
    %372 = arith.cmpi sle, %370, %371 : vector<32x1xi32>
    %373 = arith.andi %368, %372 : vector<32x1xi1>
    %cst_182 = arith.constant 0.000000e+00 : f32
    %374 = vector.shape_cast %373 : vector<32x1xi1> to vector<32x1xi1>
    %375 = vector.broadcast %374 : vector<32x1xi1> to vector<32x2xi1>
    %376 = vector.broadcast %cst_182 : f32 to vector<32x2xf32>
    %377 = arith.select %375, %364, %376 : vector<32x2xi1>, vector<32x2xf32>
    %378 = tpu.concatenate %363, %347, %377 in 1 : vector<32x2xf32>, vector<32x2xf32>, vector<32x2xf32> -> vector<32x6xf32>
    %cst_183 = arith.constant dense<0.000000e+00> : vector<32x4xf32>
    %379 = tpu.matmul %378, %348, %cst_183 {dimension_numbers = #tpu.dot_dimension_numbers<[1], [0], [0], [1], [0, 0, 1, 1], [], []>} : vector<32x6xf32>, vector<6x4xf32>, vector<32x4xf32> -> vector<32x4xf32>
    %380 = vector.broadcast %349 : vector<1x4xf32> to vector<32x4xf32>
    %381 = arith.addf %379, %380 : vector<32x4xf32>
    %cst_184 = arith.constant 0.000000e+00 : f32
    %382 = vector.broadcast %cst_184 : f32 to vector<32x4xf32>
    %383 = arith.maximumf %381, %382 : vector<32x4xf32>
    %c0_185 = arith.constant 0 : index
    %c128 = arith.constant 128 : index
    %384 = vector.load %arg2[%c0_185, %c128] : memref<72x137xf32, #tpu.memory_space<vmem>>, vector<12x6xf32>
    %c0_186 = arith.constant 0 : index
    %c128_187 = arith.constant 128 : index
    %385 = vector.load %arg3[%c0_186, %c128_187] : memref<1x137xf32, #tpu.memory_space<vmem>>, vector<1x6xf32>
    %c1_i32_188 = arith.constant 1 : i32
    %386 = tpu.dynamic_rotate %383 by %c1_i32_188 dim 0 : vector<32x4xf32>, i32 -> vector<32x4xf32>
    %c-1_i32_189 = arith.constant -1 : i32
    %387 = vector.broadcast %c-1_i32_189 : i32 to vector<32x1xi32>
    %388 = arith.addi %5, %387 : vector<32x1xi32>
    %c0_i32_190 = arith.constant 0 : i32
    %389 = vector.broadcast %c0_i32_190 : i32 to vector<32x1xi32>
    %390 = arith.cmpi sge, %388, %389 : vector<32x1xi32>
    %c-1_i32_191 = arith.constant -1 : i32
    %391 = vector.broadcast %c-1_i32_191 : i32 to vector<32x1xi32>
    %392 = arith.addi %5, %391 : vector<32x1xi32>
    %c15_i32_192 = arith.constant 15 : i32
    %393 = vector.broadcast %c15_i32_192 : i32 to vector<32x1xi32>
    %394 = arith.cmpi sle, %392, %393 : vector<32x1xi32>
    %395 = arith.andi %390, %394 : vector<32x1xi1>
    %cst_193 = arith.constant 0.000000e+00 : f32
    %396 = vector.shape_cast %395 : vector<32x1xi1> to vector<32x1xi1>
    %397 = vector.broadcast %396 : vector<32x1xi1> to vector<32x4xi1>
    %398 = vector.broadcast %cst_193 : f32 to vector<32x4xf32>
    %399 = arith.select %397, %386, %398 : vector<32x4xi1>, vector<32x4xf32>
    %c31_i32_194 = arith.constant 31 : i32
    %400 = tpu.dynamic_rotate %383 by %c31_i32_194 dim 0 : vector<32x4xf32>, i32 -> vector<32x4xf32>
    %c1_i32_195 = arith.constant 1 : i32
    %401 = vector.broadcast %c1_i32_195 : i32 to vector<32x1xi32>
    %402 = arith.addi %5, %401 : vector<32x1xi32>
    %c0_i32_196 = arith.constant 0 : i32
    %403 = vector.broadcast %c0_i32_196 : i32 to vector<32x1xi32>
    %404 = arith.cmpi sge, %402, %403 : vector<32x1xi32>
    %c1_i32_197 = arith.constant 1 : i32
    %405 = vector.broadcast %c1_i32_197 : i32 to vector<32x1xi32>
    %406 = arith.addi %5, %405 : vector<32x1xi32>
    %c15_i32_198 = arith.constant 15 : i32
    %407 = vector.broadcast %c15_i32_198 : i32 to vector<32x1xi32>
    %408 = arith.cmpi sle, %406, %407 : vector<32x1xi32>
    %409 = arith.andi %404, %408 : vector<32x1xi1>
    %cst_199 = arith.constant 0.000000e+00 : f32
    %410 = vector.shape_cast %409 : vector<32x1xi1> to vector<32x1xi1>
    %411 = vector.broadcast %410 : vector<32x1xi1> to vector<32x4xi1>
    %412 = vector.broadcast %cst_199 : f32 to vector<32x4xf32>
    %413 = arith.select %411, %400, %412 : vector<32x4xi1>, vector<32x4xf32>
    %414 = tpu.concatenate %399, %383, %413 in 1 : vector<32x4xf32>, vector<32x4xf32>, vector<32x4xf32> -> vector<32x12xf32>
    %cst_200 = arith.constant dense<0.000000e+00> : vector<32x6xf32>
    %415 = tpu.matmul %414, %384, %cst_200 {dimension_numbers = #tpu.dot_dimension_numbers<[1], [0], [0], [1], [0, 0, 1, 1], [], []>} : vector<32x12xf32>, vector<12x6xf32>, vector<32x6xf32> -> vector<32x6xf32>
    %416 = vector.broadcast %385 : vector<1x6xf32> to vector<32x6xf32>
    %417 = arith.addf %415, %416 : vector<32x6xf32>
    %cst_201 = arith.constant 0.000000e+00 : f32
    %418 = vector.broadcast %cst_201 : f32 to vector<32x6xf32>
    %419 = arith.maximumf %417, %418 : vector<32x6xf32>
    %420 = tpu.concatenate %347, %383, %419 in 1 : vector<32x2xf32>, vector<32x4xf32>, vector<32x6xf32> -> vector<32x12xf32>
    %421 = arith.addf %311, %420 : vector<32x12xf32>
    %cst_202 = arith.constant 0.000000e+00 : f32
    %422 = vector.broadcast %cst_202 : f32 to vector<32x12xf32>
    %423 = arith.maximumf %421, %422 : vector<32x12xf32>
    %c0_203 = arith.constant 0 : index
    %c134 = arith.constant 134 : index
    %424 = vector.load %arg2[%c0_203, %c134] : memref<72x137xf32, #tpu.memory_space<vmem>>, vector<12x3xf32>
    %c0_204 = arith.constant 0 : index
    %c134_205 = arith.constant 134 : index
    %425 = vector.load %arg3[%c0_204, %c134_205] : memref<1x137xf32, #tpu.memory_space<vmem>>, vector<1x3xf32>
    %cst_206 = arith.constant dense<0.000000e+00> : vector<32x3xf32>
    %426 = tpu.matmul %423, %424, %cst_206 {dimension_numbers = #tpu.dot_dimension_numbers<[1], [0], [0], [1], [0, 0, 1, 1], [], []>} : vector<32x12xf32>, vector<12x3xf32>, vector<32x3xf32> -> vector<32x3xf32>
    %427 = vector.broadcast %425 : vector<1x3xf32> to vector<32x3xf32>
    %428 = arith.addf %426, %427 : vector<32x3xf32>
    %c0_207 = arith.constant 0 : index
    %c0_208 = arith.constant 0 : index
    %429 = vector.load %arg4[%c0_207, %c0_208] : memref<32x3xf32, #tpu.memory_space<vmem>>, vector<32x3xf32>
    tpu.vector_store %arg4[%c0_207, %c0_208], %428 {strides = array<i32>} : memref<32x3xf32, #tpu.memory_space<vmem>>, vector<32x3xf32>,
    return
  }
  func.func @transform_0(%arg0: i32) -> (i32, i32) {
    %c0_i32 = arith.constant 0 : i32
    %c0_i32_0 = arith.constant 0 : i32
    %c0_i32_1 = arith.constant 0 : i32
    return %c0_i32, %c0_i32_0 : i32, i32
  }
  func.func @transform_1(%arg0: i32) -> (i32, i32) {
    %c0_i32 = arith.constant 0 : i32
    %c0_i32_0 = arith.constant 0 : i32
    %c0_i32_1 = arith.constant 0 : i32
    return %c0_i32, %c0_i32_0 : i32, i32
  }
  func.func @transform_2(%arg0: i32) -> (i32, i32) {
    %c0_i32 = arith.constant 0 : i32
    %c0_i32_0 = arith.constant 0 : i32
    %c0_i32_1 = arith.constant 0 : i32
    return %c0_i32, %c0_i32_0 : i32, i32
  }
  func.func @transform_3(%arg0: i32) -> (i32, i32) {
    %c0_i32 = arith.constant 0 : i32
    %c0_i32_0 = arith.constant 0 : i32
    %c0_i32_1 = arith.constant 0 : i32
    return %c0_i32, %c0_i32_0 : i32, i32
  }
}

</mosaic_0001>

<bundles_post_ra>
// kernel: tpu_custom_call.1
= control target key start
LH: loop header
LB: loop body
LE: loop exit
PB: predicated region body
PF: predicated region fallthrough
CT: control target
= control target key end

     0   :  { %8 = vsyncpa [#allocation4], 0  ;;  %s3360_s12 = smov [#allocation3]   ;;  %s4274_s0 = inlined_call_operand.vmem [shape: f32[32,4], index: 0, kind: input, shape index: {}]   ;;  %s4275_s1 = inlined_call_operand.hbm [shape: f32[72,137], index: 1, kind: input, shape index: {}]   ;;  %s4276_s2 = inlined_call_operand.vmem [shape: f32[1,137], index: 2, kind: input, shape index: {}]   ;;  %s4277_s3 = inlined_call_operand.vmem [shape: f32[32,3], index: 3, kind: output, shape index: {}]  }
   0x1   :  { %s16_s13 = sshll.u32 %s3360_s12, 4  ;;  %s3336_s16 = scalar_lea.hbm %s4275_s1, 2304  ;;  %s17_s13 = int_to_ptr.vmem [resolvable:$true] %s16_s13 }
   0x2   :  { %p3337_p0 = scmp.ne.s32.totalorder %s4275_s1, %s3336_s16  ;;  %p3340_p1 = scmp.lt.u32.totalorder %s3336_s16, %s4275_s1 }
   0x4   :  { %p3342_p2 = pnand %p3340_p1, %p3337_p0 }
   0x6   :  { %3345 = shalt.err (!%p3342_p2)
}
   0x7   :  { %s3346_s21 = scalar_lea.vmem %s17_s13, 2304  ;;  %p3351_p4 = scmp.lt.s32.totalorder %s17_s13, %s17_s13 }
   0x8   :  { %p3347_p3 = scmp.ne.s32.totalorder %s17_s13, %s3346_s21  ;;  %p3352_p5 = scmp.lt.s32.totalorder %s3346_s21, %s3346_s21 }
   0xa   :  { %p3353_p6 = por %p3352_p5, %p3351_p4 }
   0xc   :  { %p3354_p7 = pnand %p3353_p6, %p3347_p3 }
   0xe   :  { %3357 = shalt.err (!%p3354_p7)
}
   0xf   :  { %s3361_s22 = smov 256   ;;  %s3362_s23 = smov 16  }
  0x10   :  { %22 = dma.hbm_to_vmem [thread:$0]  %s4275_s1, 2304, %s17_s13, [#allocation4], %s3361_s22, %s3361_s22, %s3362_s23  }
  0x11   :  { %3358 = dma.done.wait [#allocation4], 2304  }
  0x12   :  { %3359 = vsyncadd [#allocation4], 4294964992  ;;  %v28_v0 = vlaneseq  ;;  %vm61_vm0 = vcmask 31744   ;;  %vm74_vm1 = vcmask 1043456   ;;  %v50_v2 = vld [vmem:[%s4274_s0 + $0x8] sm:$0xff]  ;;  %v3421_v3 = vld [vmem:[#allocation3] sm:$0xff] }
  0x13   :  { %v164_v4 = vld [vmem:[#allocation3 + $0x10] sm:$0xf]  ;;  %s3363_s28 = smov 4   ;;  %v166_v7 = vrot.slane %v50_v2, 7  ;;  %v49_v10 = vld [vmem:[%s4274_s0] sm:$0xff]  ;;  %v203_v11 = vrot.slane %v50_v2, 1 }
  0x14   :  { %v3416_v1 = vshrl.u32 %v28_v0, 7  ;;  %241 = vrot.lane.b32.xlu1 %v50_v2, %s3363_s28  ;;  %v3427_v8 = vpack.i.bf16 %v164_v4, %v3421_v3  ;;  %v51_v9 = vld [vmem:[%s4274_s0 + $0x10] sm:$0xff]  ;;  %v52_v12 = vld [vmem:[%s4274_s0 + $0x18] sm:$0xff]  ;;  %v165_v14 = vrot.slane %v49_v10, 7  ;;  %v202_v15 = vrot.slane %v49_v10, 1  ;;  %2926 = vmatprep.mubr.msk.f32.mxu0 %vm61_vm0, %v49_v10  ;;  %s3364_s7 = smov 116  }
  0x15   :  { %v167_v13 = vrot.slane %v51_v9, 7  ;;  %v168_v16 = vrot.slane %v52_v12, 7  ;;  %v53_v17 = vld [vmem:[#allocation3] sm:$0xf]  ;;  %2929 = vmatprep.mubr.msk.f32.mxu1 %vm61_vm0, %v51_v9  ;;  %v204_v21 = vrot.slane %v51_v9, 1  ;;  %v205_v25 = vrot.slane %v52_v12, 1 }
  0x16   :  { %v30_v5 = vadd.s32 8, %v3416_v1  ;;  %v32_v6 = vadd.s32 24, %v3416_v1  ;;  %vm169_vm2 = vcmp.lt.s32.totalorder %v3416_v1, 1  ;;  %3236 = vrot.lane.b32.xlu0 %v3427_v8, %s3364_s7  ;;  %vm206_vm3 = vcmp.lt.s32.totalorder %v3416_v1, 7  ;;  %3210 = vmatprep.subr.msk.mxu1 %vm74_vm1, %v53_v17  ;;  %s3365_s0 = smov 8   ;;  %s3367_s10 = smov 114  }
  0x17   :  { %v172_v18 = vsel %vm169_vm2, %v165_v14, %v166_v7  ;;  %v171_v19 = vsel %vm169_vm2, %v166_v7, %v167_v13  ;;  %3211 = vmatpush3.msk.msra.mxu1 %vm74_vm1, %v53_v17  ;;  %v173_v20 = vsel %vm169_vm2, %v168_v16, %v165_v14  ;;  %v209_v24 = vsel %vm206_vm3, %v202_v15, %v203_v11  ;;  %v3482_v32 = vld [vmem:[%s4276_s2] ss:$0 sm:$0xff]  ;;  %s3368_s11 = smov 2   ;;  %s3369_s12 = smov 110  }
  0x18   :  { %243 = vrot.lane.b32.xlu1 %v51_v9, %s3363_s28  ;;  %v3453_v22 = vadd.s32 1, %v30_v5  ;;  %v2742_v23 = vadd.s32 4294967280, %v32_v6  ;;  %2930 = vmatmul.mubr.msk.f32.vlgmr.msra.gmra.mrb[0].mxu1 %vm61_vm0, %v52_v12  ;;  %v170_v26 = vsel %vm169_vm2, %v167_v13, %v168_v16  ;;  %v208_v27 = vsel %vm206_vm3, %v203_v11, %v204_v21  ;;  %v390_v58 = vld [vmem:[#allocation3] sm:$0x3f]  ;;  %s3370_s13 = smov 6   ;;  %s3371_s14 = smov 92  }
  0x19   :  { %2924 = vmatprep.subr.msk.mxu0 %vm74_vm1, %v53_v17  ;;  %v207_v29 = vsel %vm206_vm3, %v204_v21, %v205_v25  ;;  %v210_v31 = vsel %vm206_vm3, %v205_v25, %v202_v15  ;;  %v3491_v34 = vadd.s32 4294967295, %v3416_v1  ;;  %vm3366_vm7 = vmmov 1   ;;  %s3372_s15 = smov 55   ;;  %s3373_s16 = smov 12  }
  0x1a   :  { %239 = vrot.lane.b32.xlu0 %v49_v10, %s3363_s28  ;;  %2925 = vmatpush3.msk.msra.mxu0 %vm74_vm1, %v53_v17  ;;  %vm220_vm4 = vcmp.le.s32.totalorder %v3453_v22, 15  ;;  %v3468_v28 = vadd.s32 1, %v2742_v23  ;;  %vm3496_vm8 = vmpackc.low %vm74_vm1, %vm3366_vm7  ;;  %vm271_vm9 = vcmask 64512   ;;  %vm286_vm10 = vcmask 97280   ;;  %s3374_s17 = smov 24   ;;  %s3375_s18 = smov 80  }
  0x1b   :  { %2927 = vmatmul.mubr.msk.f32.vlgmr.msra.gmra.mrb[0].mxu0 %vm61_vm0, %v50_v2  ;;  %v236_v30 = vsel %vm220_vm4, %v208_v27, 0.0  ;;  %vm178_vm6 = vcmp.ge.s32.totalorder %v3491_v34, 0  ;;  %vm475_vm11 = vcmask 1045504   ;;  %vm447_vm12 = vcmask 15360   ;;  %s3376_s19 = smov 104   ;;  %s3377_s20 = smov 51  }
  0x1c   :  { %255 = vrot.lane.b32.xlu1 %v209_v24, %s3365_s0  ;;  %vm222_vm5 = vcmp.le.s32.totalorder %v3468_v28, 15  ;;  %v198_v41 = vsel %vm178_vm6, %v173_v20, 0.0  ;;  %v200_v48 = vsel %vm178_vm6, %v171_v19, 0.0  ;;  %vm4278_vm13 = vcmask 48128   ;;  %s3378_s21 = smov 43   ;;  %s3379_s22 = smov 30  }
  0x1d   :  { %v238_v33 = vsel %vm222_vm5, %v210_v31, 0.0  ;;  %vm954_vm15 = vcmask 195584   ;;  %s3380_s25 = smov 48   ;;  %s3381_s1 = smov 18  }
  0x1e   :  { %245 = vrot.lane.b32.xlu0 %v52_v12, %s3363_s28 }
  0x20   :  { %259 = vrot.lane.b32.xlu1 %v207_v29, %s3365_s0 }
  0x22   :  { %257 = vrot.lane.b32.xlu0 %v236_v30, %s3365_s0 }
  0x24   :  { %283 = vrot.lane.b32.xlu1 %v3482_v32, %s3364_s7 }
  0x26   :  { %261 = vrot.lane.b32.xlu0 %v238_v33, %s3365_s0 }
  0x28   :  { %457 = vrot.lane.b32.xlu1 %v390_v58, %s3367_s10 }
  0x86   :  { %v242_v35 = vpop.permute.xlu1 %241 }
  0x87   :  { %v268_v50 = vsel %vm61_vm0, %v172_v18, %v242_v35 }
  0x88   :  { %v3237_v36 = vpop.permute.xlu0 %3236 }
  0x89   :  { %v3239_v37 = vunpack.i.h.bf16 %v3237_v36  ;;  %v3238_v38 = vunpack.i.l.bf16 %v3237_v36 }
  0x8a   :  { %v244_v39 = vpop.permute.xlu1 %243 }
  0x8b   :  { %v3108_v42 = vpack.c.bf16 %v3239_v37, %v3238_v38  ;;  %v269_v52 = vsel %vm61_vm0, %v200_v48, %v244_v39 }
  0x8c   :  { %v240_v43 = vpop.permute.xlu0 %239 }
  0x8d   :  { %v267_v44 = vsel %vm61_vm0, %v198_v41, %v240_v43  ;;  %3110 = vmatprep.subr.msk.bf16.mxu1 %vm3496_vm8, %v3108_v42 }
  0x8e   :  { %3113 = vmatpush3.bf16.msk.msra.mxu1 %vm3496_vm8, %v3108_v42  ;;  %v256_v45 = vpop.permute.xlu1 %255 }
  0x8f   :  { %v272_v46 = vsel %vm271_vm9, %v267_v44, %v256_v45 }
  0x90   :  { %v246_v47 = vpop.permute.xlu0 %245  ;;  %2936 = vmatprep.mubr.msk.f32.mxu1 %vm286_vm10, %v272_v46 }
  0x91   :  { %v270_v55 = vsel %vm61_vm0, %v170_v26, %v246_v47 }
  0x92   :  { %v260_v49 = vpop.permute.xlu1 %259 }
  0x93   :  { %v274_v54 = vsel %vm271_vm9, %v269_v52, %v260_v49 }
  0x94   :  { %v258_v51 = vpop.permute.xlu0 %257 }
  0x95   :  { %v273_v53 = vsel %vm271_vm9, %v268_v50, %v258_v51 }
  0x96   :  { %2937 = vmatmul.mubr.msk.f32.vlgmr.msra.gmra.mrb[2].mxu1 %vm286_vm10, %v273_v53  ;;  %v284_v61 = vpop.permute.xlu1 %283 }
  0x97   :  { %2939 = vmatprep.mubr.msk.f32.mxu1 %vm286_vm10, %v274_v54 }
  0x98   :  { %v262_v56 = vpop.permute.xlu0 %261 }
  0x99   :  { %v275_v57 = vsel %vm271_vm9, %v270_v55, %v262_v56 }
  0x9a   :  { %2940 = vmatmul.mubr.msk.f32.gmra.mrb[4].mxu1 %vm286_vm10, %v275_v57  ;;  %v458_v62 = vpop.permute.xlu1 %457 }
  0x9b   :  { %2942 = vmatprep.subr.msk.mxu0 %vm475_vm11, %v458_v62 }
  0x9c   :  { %2943 = vmatpush3.msk.msra.mxu0 %vm475_vm11, %v458_v62 }
  0xeb   :  { %v3521_v59 = vpop.f32.mrb[0].mxu1 }
  0xec   :  { %v3523_v60 = vpop.f32.mrb[1].mxu1 }
  0xee   :  { %v3548_v19 = vpop.f32.mrb[0].mxu0 }
  0xef   :  { %v3550_v20 = vpop.f32.mrb[1].mxu0 }
 0x169   :  { %v2938_v63 = vpop.f32.mrb[2].mxu1 }
 0x16a   :  { %v373_v0 = vadd.f32 %v2938_v63, %v284_v61  ;;  %v367_v2 = vpop.f32.mrb[3].mxu1 }
 0x16b   :  { %v368_v4 = vadd.f32 %v367_v2, %v284_v61 }
 0x16c   :  { %v3527_v5 = vmax.f32 %v373_v0, 0.0 }
 0x16d   :  { %v3529_v6 = vmax.f32 %v368_v4, 0.0  ;;  %v2941_v7 = vpop.f32.mrb[4].mxu1 }
 0x16e   :  { %v383_v9 = vadd.f32 %v2941_v7, %v284_v61  ;;  %421 = vrot.lane.b32.xlu1 %v3527_v5, %s3368_s11  ;;  %v377_v10 = vpop.f32.mrb[5].mxu1  ;;  %v404_v11 = vrot.slane %v3527_v5, 1  ;;  %v392_v42 = vrot.slane %v3527_v5, 7 }
 0x16f   :  { %v378_v12 = vadd.f32 %v377_v10, %v284_v61  ;;  %419 = vrot.lane.b32.xlu0 %v3529_v6, %s3368_s11  ;;  %v403_v13 = vrot.slane %v3529_v6, 1  ;;  %v391_v29 = vrot.slane %v3529_v6, 7 }
 0x170   :  { %v3537_v14 = vmax.f32 %v383_v9, 0.0 }
 0x171   :  { %v3539_v15 = vmax.f32 %v378_v12, 0.0  ;;  %v409_v16 = vsel %vm206_vm3, %v403_v13, %v404_v11  ;;  %v397_v45 = vsel %vm169_vm2, %v391_v29, %v392_v42 }
 0x172   :  { %v406_v17 = vrot.slane %v3537_v14, 1  ;;  %v394_v27 = vrot.slane %v3537_v14, 7 }
 0x173   :  { %423 = vrot.lane.b32.xlu1 %v3539_v15, %s3368_s11  ;;  %435 = vrot.lane.b32.xlu0 %v409_v16, %s3363_s28  ;;  %v405_v18 = vrot.slane %v3539_v15, 1  ;;  %v393_v38 = vrot.slane %v3539_v15, 7 }
 0x174   :  { %v410_v25 = vsel %vm206_vm3, %v406_v17, %v403_v13  ;;  %v398_v33 = vsel %vm169_vm2, %v394_v27, %v391_v29 }
 0x175   :  { %v407_v21 = vsel %vm206_vm3, %v405_v18, %v406_v17  ;;  %v408_v23 = vsel %vm206_vm3, %v404_v11, %v405_v18  ;;  %v414_v26 = vsel %vm222_vm5, %v410_v25, 0.0  ;;  %v399_v35 = vsel %vm178_vm6, %v398_v33, 0.0 }
 0x176   :  { %v412_v24 = vsel %vm220_vm4, %v408_v23, 0.0  ;;  %v396_v44 = vsel %vm169_vm2, %v392_v42, %v393_v38  ;;  %v395_v53 = vsel %vm169_vm2, %v393_v38, %v394_v27 }
 0x177   :  { %439 = vrot.lane.b32.xlu1 %v407_v21, %s3363_s28  ;;  %425 = vrot.lane.b32.xlu0 %v3537_v14, %s3368_s11  ;;  %v401_v48 = vsel %vm178_vm6, %v396_v44, 0.0 }
 0x17b   :  { %437 = vrot.lane.b32.xlu0 %v412_v24, %s3363_s28  ;;  %459 = vrot.lane.b32.xlu1 %v3482_v32, %s3367_s10 }
 0x17f   :  { %441 = vrot.lane.b32.xlu0 %v414_v26, %s3363_s28 }
 0x183   :  { %3241 = vrot.lane.b32.xlu0 %v3427_v8, %s3369_s12 }
 0x1e0   :  { %v422_v30 = vpop.permute.xlu1 %421 }
 0x1e1   :  { %v420_v31 = vpop.permute.xlu0 %419  ;;  %v449_v47 = vsel %vm447_vm12, %v397_v45, %v422_v30 }
 0x1e2   :  { %v448_v36 = vsel %vm447_vm12, %v399_v35, %v420_v31 }
 0x1e5   :  { %v436_v37 = vpop.permute.xlu0 %435  ;;  %v424_v39 = vpop.permute.xlu1 %423 }
 0x1e6   :  { %v452_v41 = vsel %vm61_vm0, %v448_v36, %v436_v37  ;;  %v450_v50 = vsel %vm447_vm12, %v401_v48, %v424_v39 }
 0x1e7   :  { %2944 = vmatprep.mubr.msk.f32.mxu0 %vm4278_vm13, %v452_v41 }
 0x1e9   :  { %v426_v43 = vpop.permute.xlu0 %425  ;;  %v440_v46 = vpop.permute.xlu1 %439 }
 0x1ea   :  { %v454_v52 = vsel %vm61_vm0, %v450_v50, %v440_v46  ;;  %v451_v54 = vsel %vm447_vm12, %v395_v53, %v426_v43 }
 0x1ed   :  { %v438_v49 = vpop.permute.xlu0 %437  ;;  %v460_v63 = vpop.permute.xlu1 %459 }
 0x1ee   :  { %v453_v51 = vsel %vm61_vm0, %v449_v47, %v438_v49 }
 0x1ef   :  { %2945 = vmatmul.mubr.msk.f32.vlgmr.msra.gmra.mrb[2].mxu0 %vm4278_vm13, %v453_v51 }
 0x1f0   :  { %2947 = vmatprep.mubr.msk.f32.mxu0 %vm4278_vm13, %v454_v52 }
 0x1f1   :  { %v442_v55 = vpop.permute.xlu0 %441 }
 0x1f2   :  { %v455_v56 = vsel %vm61_vm0, %v451_v54, %v442_v55 }
 0x1f3   :  { %2948 = vmatmul.mubr.msk.f32.gmra.mrb[4].mxu0 %vm4278_vm13, %v455_v56 }
 0x1f5   :  { %v3242_v57 = vpop.permute.xlu0 %3241 }
 0x1f6   :  { %v3244_v58 = vunpack.i.h.bf16 %v3242_v57  ;;  %v3243_v61 = vunpack.i.l.bf16 %v3242_v57 }
 0x1f8   :  { %v3114_v62 = vpack.c.bf16 %v3244_v58, %v3243_v61 }
 0x1fa   :  { %3116 = vmatprep.subr.msk.bf16.mxu1 %vm3496_vm8, %v3114_v62 }
 0x1fb   :  { %3119 = vmatpush3.bf16.msk.msra.mxu1 %vm3496_vm8, %v3114_v62 }
 0x2c2   :  { %v2946_v0 = vpop.f32.mrb[2].mxu0 }
 0x2c3   :  { %v550_v2 = vadd.f32 %v2946_v0, %v460_v63  ;;  %v544_v4 = vpop.f32.mrb[3].mxu0 }
 0x2c4   :  { %v545_v7 = vadd.f32 %v544_v4, %v460_v63 }
 0x2c5   :  { %v564_v9 = vmax.f32 %v550_v2, 0.0 }
 0x2c6   :  { %v563_v10 = vmax.f32 %v545_v7, 0.0  ;;  %v2949_v11 = vpop.f32.mrb[4].mxu0 }
 0x2c7   :  { %v560_v12 = vadd.f32 %v2949_v11, %v460_v63  ;;  %597 = vrot.lane.b32.xlu0 %v564_v9, %s3363_s28  ;;  %v554_v13 = vpop.f32.mrb[5].mxu0  ;;  %v580_v16 = vrot.slane %v564_v9, 1  ;;  %v568_v17 = vrot.slane %v564_v9, 7 }
 0x2c8   :  { %v555_v18 = vadd.f32 %v554_v13, %v460_v63  ;;  %595 = vrot.lane.b32.xlu1 %v563_v10, %s3363_s28  ;;  %v579_v21 = vrot.slane %v563_v10, 1  ;;  %v567_v23 = vrot.slane %v563_v10, 7 }
 0x2c9   :  { %v566_v24 = vmax.f32 %v560_v12, 0.0 }
 0x2ca   :  { %v565_v25 = vmax.f32 %v555_v18, 0.0  ;;  %v585_v26 = vsel %vm206_vm3, %v579_v21, %v580_v16  ;;  %v573_v27 = vsel %vm169_vm2, %v567_v23, %v568_v17  ;;  %v3655_v18 = vld [vmem:[#allocation3 + $0x20] sm:$0xff] }
 0x2cb   :  { %v570_v29 = vrot.slane %v566_v24, 7  ;;  %601 = vrot.lane.b32.xlu0 %v566_v24, %s3363_s28  ;;  %v582_v30 = vrot.slane %v566_v24, 1 }
 0x2cc   :  { %611 = vrot.lane.b32.xlu1 %v585_v26, %s3365_s0  ;;  %v581_v31 = vrot.slane %v565_v25, 1  ;;  %v569_v33 = vrot.slane %v565_v25, 7 }
 0x2cd   :  { %v586_v35 = vsel %vm206_vm3, %v582_v30, %v579_v21  ;;  %v574_v36 = vsel %vm169_vm2, %v570_v29, %v567_v23  ;;  %v3657_v21 = vld [vmem:[#allocation3 + $0x30] sm:$0xff] }
 0x2ce   :  { %v584_v37 = vsel %vm206_vm3, %v580_v16, %v581_v31  ;;  %v583_v38 = vsel %vm206_vm3, %v581_v31, %v582_v30  ;;  %v571_v41 = vsel %vm169_vm2, %v569_v33, %v570_v29  ;;  %v572_v42 = vsel %vm169_vm2, %v568_v17, %v569_v33  ;;  %v897_v29 = vld [vmem:[#allocation3 + $0x40] sm:$0xf] }
 0x2cf   :  { %v588_v39 = vsel %vm220_vm4, %v584_v37, 0.0  ;;  %v590_v43 = vsel %vm222_vm5, %v586_v35, 0.0  ;;  %v575_v46 = vsel %vm178_vm6, %v574_v36, 0.0  ;;  %v577_v55 = vsel %vm178_vm6, %v572_v42, 0.0 }
 0x2d0   :  { %613 = vrot.lane.b32.xlu0 %v588_v39, %s3365_s0  ;;  %599 = vrot.lane.b32.xlu1 %v565_v25, %s3363_s28  ;;  %v3664_v26 = vpack.i.bf16 %v3657_v21, %v3655_v18  ;;  %v150_v36 = vadd.f32 %v3548_v19, %v3482_v32  ;;  %v145_v39 = vadd.f32 %v3482_v32, %v3550_v20 }
 0x2d1   :  { %v160_v19 = vadd.f32 %v3521_v59, %v3482_v32 }
 0x2d4   :  { %617 = vrot.lane.b32.xlu0 %v590_v43, %s3365_s0  ;;  %615 = vrot.lane.b32.xlu1 %v583_v38, %s3365_s0 }
 0x2d8   :  { %742 = vrot.lane.b32.xlu0 %v563_v10, %s3368_s11  ;;  %636 = vrot.lane.b32.xlu1 %v3482_v32, %s3369_s12 }
 0x2dc   :  { %746 = vrot.lane.b32.xlu0 %v565_v25, %s3368_s11  ;;  %744 = vrot.lane.b32.xlu1 %v564_v9, %s3368_s11 }
 0x2e0   :  { %748 = vrot.lane.b32.xlu1 %v566_v24, %s3368_s11  ;;  %v3659_v24 = vld [vmem:[#allocation3 + $0x10] sm:$0xff] }
 0x339   :  { %v598_v44 = vpop.permute.xlu0 %597 }
 0x33a   :  { %v596_v45 = vpop.permute.xlu1 %595  ;;  %v624_v51 = vsel %vm61_vm0, %v573_v27, %v598_v44  ;;  %v3245_v27 = vpack.i.bf16 %v3659_v24, %v3421_v3 }
 0x33b   :  { %v623_v48 = vsel %vm61_vm0, %v575_v46, %v596_v45 }
 0x33d   :  { %v602_v47 = vpop.permute.xlu0 %601 }
 0x33e   :  { %v612_v49 = vpop.permute.xlu1 %611  ;;  %v626_v56 = vsel %vm61_vm0, %v571_v41, %v602_v47 }
 0x33f   :  { %v627_v50 = vsel %vm271_vm9, %v623_v48, %v612_v49 }
 0x340   :  { %2954 = vmatprep.mubr.msk.f32.mxu1 %vm286_vm10, %v627_v50 }
 0x342   :  { %v614_v52 = vpop.permute.xlu0 %613  ;;  %v600_v53 = vpop.permute.xlu1 %599 }
 0x343   :  { %v628_v54 = vsel %vm271_vm9, %v624_v51, %v614_v52  ;;  %v625_v57 = vsel %vm61_vm0, %v577_v55, %v600_v53 }
 0x344   :  { %2955 = vmatmul.mubr.msk.f32.vlgmr.msra.gmra.mrb[6].mxu1 %vm286_vm10, %v628_v54 }
 0x346   :  { %v618_v58 = vpop.permute.xlu0 %617  ;;  %v616_v61 = vpop.permute.xlu1 %615 }
 0x347   :  { %v630_v62 = vsel %vm271_vm9, %v626_v56, %v618_v58  ;;  %v629_v63 = vsel %vm271_vm9, %v625_v57, %v616_v61 }
 0x348   :  { %2957 = vmatprep.mubr.msk.f32.mxu1 %vm286_vm10, %v629_v63 }
 0x349   :  { %2958 = vmatmul.mubr.msk.f32.gmra.mrb[8].mxu1 %vm286_vm10, %v630_v62 }
 0x34a   :  { %v637_v0 = vpop.permute.xlu1 %636  ;;  %v743_v31 = vpop.permute.xlu0 %742 }
 0x34b   :  { %v770_v41 = vsel %vm447_vm12, %v3529_v6, %v743_v31  ;;  %v155_v6 = vadd.f32 %v3482_v32, %v3523_v60 }
 0x34e   :  { %v745_v30 = vpop.permute.xlu1 %744  ;;  %v747_v35 = vpop.permute.xlu0 %746 }
 0x34f   :  { %v771_v37 = vsel %vm447_vm12, %v3527_v5, %v745_v30  ;;  %v772_v49 = vsel %vm447_vm12, %v3539_v15, %v747_v35 }
 0x352   :  { %v749_v33 = vpop.permute.xlu1 %748 }
 0x353   :  { %v773_v5 = vsel %vm447_vm12, %v3537_v14, %v749_v33 }
 0x417   :  { %v2956_v2 = vpop.f32.mrb[6].mxu1 }
 0x418   :  { %v725_v4 = vadd.f32 %v2956_v2, %v637_v0  ;;  %v719_v7 = vpop.f32.mrb[7].mxu1 }
 0x419   :  { %v720_v9 = vadd.f32 %v719_v7, %v637_v0 }
 0x41a   :  { %v739_v10 = vmax.f32 %v725_v4, 0.0 }
 0x41b   :  { %v738_v11 = vmax.f32 %v720_v9, 0.0 }
 0x41c   :  { %760 = vrot.lane.b32.xlu1 %v739_v10, %s3370_s13  ;;  %v2959_v12 = vpop.f32.mrb[8].mxu1 }
 0x41d   :  { %v735_v13 = vadd.f32 %v2959_v12, %v637_v0  ;;  %v729_v16 = vpop.f32.mrb[9].mxu1  ;;  %758 = vrot.lane.b32.xlu0 %v738_v11, %s3370_s13 }
 0x41e   :  { %v730_v17 = vadd.f32 %v729_v16, %v637_v0 }
 0x41f   :  { %v741_v23 = vmax.f32 %v735_v13, 0.0 }
 0x420   :  { %v740_v25 = vmax.f32 %v730_v17, 0.0 }
 0x421   :  { %764 = vrot.lane.b32.xlu1 %v741_v23, %s3370_s13 }
 0x422   :  { %762 = vrot.lane.b32.xlu0 %v740_v25, %s3370_s13 }
 0x425   :  { %3251 = vrot.lane.b32.xlu1 %v3664_v26, %s3371_s14 }
 0x426   :  { %3246 = vrot.lane.b32.xlu0 %v3245_v27, %s3371_s14 }
 0x429   :  { %972 = vrot.lane.b32.xlu1 %v897_v29, %s3371_s14 }
 0x42a   :  { %3256 = vrot.lane.b32.xlu0 %v3245_v27, %s3372_s15 }
 0x42e   :  { %3261 = vrot.lane.b32.xlu0 %v3664_v26, %s3372_s15 }
 0x48e   :  { %v761_v38 = vpop.permute.xlu1 %760 }
 0x48f   :  { %v775_v42 = vsel %vm4278_vm13, %v771_v37, %v761_v38  ;;  %v759_v43 = vpop.permute.xlu0 %758 }
 0x490   :  { %v779_v44 = vadd.f32 %v775_v42, %v150_v36  ;;  %v774_v45 = vsel %vm4278_vm13, %v770_v41, %v759_v43  ;;  %v3747_v36 = vadd.s32 1, %v3416_v1  ;;  %v1211_v42 = vld [vmem:[#allocation3 + $0x40] sm:$0xf] }
 0x491   :  { %v778_v46 = vadd.f32 %v774_v45, %v145_v39  ;;  %v1107_v45 = vld [vmem:[#allocation3 + $0x10] sm:$0xf] }
 0x492   :  { %v3686_v47 = vmax.f32 %v779_v44, 0.0  ;;  %vm1238_vm14 = vcmp.le.s32.totalorder %v3747_v36, 7 }
 0x493   :  { %v3692_v48 = vmax.f32 %v778_v46, 0.0  ;;  %v765_v20 = vpop.permute.xlu1 %764 }
 0x494   :  { %1094 = vst.msk [vmem:[#allocation2 + $0x8] sm:$0xff] %vm286_vm10, %v3686_v47  ;;  %v777_v50 = vsel %vm4278_vm13, %v773_v5, %v765_v20  ;;  %924 = vrot.lane.b32.xlu1 %v3686_v47, %s3373_s16  ;;  %v763_v59 = vpop.permute.xlu0 %762  ;;  %v911_v14 = vrot.slane %v3686_v47, 1 }
 0x495   :  { %1093 = vst.msk [vmem:[#allocation2] sm:$0xff] %vm286_vm10, %v3692_v48  ;;  %v781_v51 = vadd.f32 %v777_v50, %v160_v19  ;;  %v776_v60 = vsel %vm4278_vm13, %v772_v49, %v763_v59  ;;  %922 = vrot.lane.b32.xlu0 %v3692_v48, %s3373_s16  ;;  %2964 = vmatprep.mubr.msk.f32.mxu0 %vm286_vm10, %v3692_v48  ;;  %v910_v15 = vrot.slane %v3692_v48, 1  ;;  %vm981_vm13 = vcmask 293888  }
 0x496   :  { %v780_v52 = vadd.f32 %v776_v60, %v155_v6  ;;  %v3771_v19 = vpack.i.bf16 %v1107_v45, %v3421_v3  ;;  %v898_v6 = vrot.slane %v3692_v48, 7  ;;  %v899_v48 = vrot.slane %v3686_v47, 7 }
 0x497   :  { %v3712_v53 = vmax.f32 %v781_v51, 0.0  ;;  %v916_v54 = vsel %vm206_vm3, %v910_v15, %v911_v14  ;;  %v3252_v55 = vpop.permute.xlu1 %3251 }
 0x498   :  { %v3716_v56 = vmax.f32 %v780_v52, 0.0  ;;  %v3247_v57 = vpop.permute.xlu0 %3246  ;;  %v3254_v58 = vunpack.i.h.bf16 %v3252_v55  ;;  %v3253_v61 = vunpack.i.l.bf16 %v3252_v55 }
 0x499   :  { %1096 = vst.msk [vmem:[#allocation2 + $0x18] sm:$0xff] %vm286_vm10, %v3712_v53  ;;  %938 = vrot.lane.b32.xlu0 %v916_v54, %s3374_s17  ;;  %v913_v62 = vrot.slane %v3712_v53, 1  ;;  %v3249_v63 = vunpack.i.h.bf16 %v3247_v57  ;;  %v3248_v0 = vunpack.i.l.bf16 %v3247_v57  ;;  %v901_v20 = vrot.slane %v3712_v53, 7 }
 0x49a   :  { %1095 = vst.msk [vmem:[#allocation2 + $0x10] sm:$0xff] %vm286_vm10, %v3716_v56  ;;  %926 = vrot.lane.b32.xlu1 %v3716_v56, %s3373_s16  ;;  %v912_v2 = vrot.slane %v3716_v56, 1  ;;  %v3130_v7 = vpack.c.bf16 %v3254_v58, %v3253_v61  ;;  %v904_v61 = vsel %vm169_vm2, %v898_v6, %v899_v48 }
 0x49b   :  { %v3126_v4 = vpack.c.bf16 %v3249_v63, %v3248_v0  ;;  %v917_v10 = vsel %vm206_vm3, %v913_v62, %v910_v15  ;;  %v973_v29 = vpop.permute.xlu1 %972  ;;  %v905_v3 = vsel %vm169_vm2, %v901_v20, %v898_v6  ;;  %v900_v15 = vrot.slane %v3716_v56, 7 }
 0x49c   :  { %v914_v9 = vsel %vm206_vm3, %v912_v2, %v913_v62  ;;  %v1097_v11 = vld [vmem:[#allocation2] ss:$2 sm:$0xff]  ;;  %v1101_v12 = vld [vmem:[#allocation2 + $0x1] ss:$2 sm:$0xff]  ;;  %v915_v13 = vsel %vm206_vm3, %v911_v14, %v912_v2  ;;  %v3257_v16 = vpop.permute.xlu0 %3256  ;;  %v921_v25 = vsel %vm222_vm5, %v917_v10, 0.0  ;;  %v906_v59 = vsel %vm178_vm6, %v905_v3, 0.0 }
 0x49d   :  { %928 = vrot.lane.b32.xlu0 %v3712_v53, %s3373_s16  ;;  %3127 = vmatprep.subr.bf16.mxu1 %v3126_v4  ;;  %v3259_v17 = vunpack.i.h.bf16 %v3257_v16  ;;  %v3258_v23 = vunpack.i.l.bf16 %v3257_v16  ;;  %v3738_v27 = vmax.f32 %v1097_v11, %v1101_v12  ;;  %v919_v30 = vsel %vm220_vm4, %v915_v13, 0.0 }
 0x49e   :  { %942 = vrot.lane.b32.xlu1 %v914_v9, %s3374_s17  ;;  %3129 = vmatpush3.bf16.msra.mxu1 %v3126_v4  ;;  %v903_v55 = vsel %vm169_vm2, %v899_v48, %v900_v15  ;;  %v902_v13 = vsel %vm169_vm2, %v900_v15, %v901_v20 }
 0x49f   :  { %3131 = vmatprep.subr.bf16.mxu1 %v3130_v7  ;;  %v3140_v37 = vpack.c.bf16 %v3259_v17, %v3258_v23  ;;  %v1230_v38 = vrot.slane %v3738_v27, 1  ;;  %v908_v0 = vsel %vm178_vm6, %v903_v55, 0.0  ;;  %v1212_v12 = vrot.slane %v3738_v27, 7 }
 0x4a0   :  { %v3262_v5 = vpop.permute.xlu0 %3261 }
 0x4a1   :  { %944 = vrot.lane.b32.xlu0 %v921_v25, %s3374_s17  ;;  %v1099_v31 = vld [vmem:[#allocation2 + $0x10] ss:$2 sm:$0xff]  ;;  %v1103_v33 = vld [vmem:[#allocation2 + $0x11] ss:$2 sm:$0xff]  ;;  %v3264_v57 = vunpack.i.h.bf16 %v3262_v5  ;;  %v3263_v58 = vunpack.i.l.bf16 %v3262_v5 }
 0x4a2   :  { %940 = vrot.lane.b32.xlu1 %v919_v30, %s3374_s17  ;;  %v3744_v35 = vmax.f32 %v1099_v31, %v1103_v33  ;;  %3133 = vmatpush3.bf16.msra.mxu1 %v3130_v7 }
 0x4a3   :  { %2978 = vmatprep.subr.msk.mxu1 %vm74_vm1, %v973_v29  ;;  %v3144_v10 = vpack.c.bf16 %v3264_v57, %v3263_v58 }
 0x4a4   :  { %v1231_v39 = vrot.slane %v3744_v35, 1  ;;  %v1213_v4 = vrot.slane %v3744_v35, 7 }
 0x4a5   :  { %1250 = vrot.lane.b32.xlu0 %v3744_v35, %s3373_s16 }
 0x4a6   :  { %1248 = vrot.lane.b32.xlu1 %v3738_v27, %s3373_s16  ;;  %v1232_v41 = vsel %vm206_vm3, %v1230_v38, %v1231_v39  ;;  %2979 = vmatpush3.msk.msra.mxu1 %vm74_vm1, %v973_v29  ;;  %v1233_v44 = vsel %vm206_vm3, %v1231_v39, %v1230_v38  ;;  %v1215_v25 = vsel %vm169_vm2, %v1213_v4, %v1212_v12 }
 0x4a7   :  { %3141 = vmatprep.subr.bf16.mxu1 %v3140_v37  ;;  %v1246_v43 = vsel %vm1238_vm14, %v1232_v41, 0.0  ;;  %v1247_v46 = vsel %vm1238_vm14, %v1233_v44, 0.0  ;;  %v1228_v30 = vsel %vm178_vm6, %v1215_v25, 0.0  ;;  %v1214_v33 = vsel %vm169_vm2, %v1212_v12, %v1213_v4 }
 0x4a8   :  { %v1229_v41 = vsel %vm178_vm6, %v1214_v33, 0.0 }
 0x4a9   :  { %1279 = vrot.lane.b32.xlu0 %v1211_v42, %s3372_s15 }
 0x4aa   :  { %1256 = vrot.lane.b32.xlu1 %v1246_v43, %s3374_s17 }
 0x4ad   :  { %1285 = vrot.lane.b32.xlu0 %v3482_v32, %s3372_s15 }
 0x4ae   :  { %1258 = vrot.lane.b32.xlu1 %v1247_v46, %s3374_s17 }
 0x4b1   :  { %3271 = vrot.lane.b32.xlu0 %v3771_v19, %s3375_s18 }
 0x4b2   :  { %3266 = vrot.lane.b32.xlu1 %v3427_v8, %s3376_s19 }
 0x4b6   :  { %3276 = vrot.lane.b32.xlu1 %v3771_v19, %s3377_s20 }
 0x506   :  { %v925_v50 = vpop.permute.xlu1 %924 }
 0x507   :  { %v923_v49 = vpop.permute.xlu0 %922  ;;  %v951_v63 = vsel %vm286_vm10, %v904_v61, %v925_v50 }
 0x508   :  { %v950_v14 = vsel %vm286_vm10, %v906_v59, %v923_v49 }
 0x50b   :  { %v939_v51 = vpop.permute.xlu0 %938 }
 0x50c   :  { %v955_v8 = vsel %vm954_vm15, %v950_v14, %v939_v51  ;;  %v927_v60 = vpop.permute.xlu1 %926 }
 0x50d   :  { %2980 = vmatprep.mubr.msk.f32.mxu1 %vm981_vm13, %v955_v8  ;;  %v952_v7 = vsel %vm286_vm10, %v908_v0, %v927_v60 }
 0x50f   :  { %v929_v52 = vpop.permute.xlu0 %928 }
 0x510   :  { %v943_v54 = vpop.permute.xlu1 %942  ;;  %v953_v17 = vsel %vm286_vm10, %v902_v13, %v929_v52 }
 0x511   :  { %v957_v11 = vsel %vm954_vm15, %v952_v7, %v943_v54 }
 0x513   :  { %v945_v62 = vpop.permute.xlu0 %944 }
 0x514   :  { %v941_v2 = vpop.permute.xlu1 %940  ;;  %v958_v29 = vsel %vm954_vm15, %v953_v17, %v945_v62 }
 0x515   :  { %v956_v9 = vsel %vm954_vm15, %v951_v63, %v941_v2 }
 0x516   :  { %2981 = vmatmul.mubr.msk.f32.vlgmr.msra.gmra.mrb[10].mxu1 %vm981_vm13, %v956_v9 }
 0x517   :  { %3143 = vmatpush3.bf16.msra.mxu1 %v3140_v37  ;;  %v1251_v16 = vpop.permute.xlu0 %1250  ;;  %2983 = vmatprep.mubr.msk.f32.mxu1 %vm981_vm13, %v957_v11 }
 0x518   :  { %3145 = vmatprep.subr.bf16.mxu1 %v3144_v10  ;;  %v1249_v23 = vpop.permute.xlu1 %1248  ;;  %v1263_v43 = vsel %vm286_vm10, %v1229_v41, %v1251_v16  ;;  %v1498_v41 = vld [vmem:[#allocation3] sm:$0xff] }
 0x519   :  { %v1262_v37 = vsel %vm286_vm10, %v1228_v30, %v1249_v23 }
 0x51a   :  { %2984 = vmatmul.mubr.msk.f32.gmra.mrb[12].mxu1 %vm981_vm13, %v958_v29 }
 0x51b   :  { %3147 = vmatpush3.bf16.msra.mxu1 %v3144_v10  ;;  %v1280_v31 = vpop.permute.xlu0 %1279 }
 0x51c   :  { %v1257_v38 = vpop.permute.xlu1 %1256  ;;  %3001 = vmatprep.subr.msk.mxu1 %vm74_vm1, %v1280_v31 }
 0x51d   :  { %v1264_v39 = vsel %vm954_vm15, %v1262_v37, %v1257_v38 }
 0x51e   :  { %3003 = vmatprep.mubr.msk.f32.mxu1 %vm981_vm13, %v1264_v39 }
 0x51f   :  { %3002 = vmatpush3.msk.msra.mxu1 %vm74_vm1, %v1280_v31  ;;  %v1286_v42 = vpop.permute.xlu0 %1285  ;;  %vm1766_vm1 = vcmask 1046528  }
 0x520   :  { %v1259_v44 = vpop.permute.xlu1 %1258 }
 0x521   :  { %v1265_v45 = vsel %vm954_vm15, %v1263_v43, %v1259_v44 }
 0x522   :  { %3004 = vmatmul.mubr.msk.f32.vlgmr.msra.gmra.mrb[14].mxu1 %vm981_vm13, %v1265_v45  ;;  %vm1531_vm13 = vcmask 130048  }
 0x523   :  { %v3272_v46 = vpop.permute.xlu0 %3271 }
 0x524   :  { %v3267_v5 = vpop.permute.xlu1 %3266  ;;  %v3274_v20 = vunpack.i.h.bf16 %v3272_v46  ;;  %v3273_v6 = vunpack.i.l.bf16 %v3272_v46 }
 0x525   :  { %v3269_v49 = vunpack.i.h.bf16 %v3267_v5  ;;  %v3268_v3 = vunpack.i.l.bf16 %v3267_v5 }
 0x526   :  { %v3134_v59 = vpack.c.bf16 %v3274_v20, %v3273_v6 }
 0x527   :  { %v3120_v50 = vpack.c.bf16 %v3269_v49, %v3268_v3 }
 0x529   :  { %3122 = vmatprep.subr.msk.bf16.mxu0 %vm3496_vm8, %v3120_v50 }
 0x52a   :  { %3125 = vmatpush3.bf16.msk.msra.mxu0 %vm3496_vm8, %v3120_v50 }
 0x52b   :  { %3136 = vmatprep.subr.msk.bf16.mxu0 %vm3496_vm8, %v3134_v59 }
 0x52d   :  { %2965 = vmatmul.mubr.msk.f32.vlgmr.msra.gmra.mrb[6].mxu0 %vm286_vm10, %v3686_v47 }
 0x52e   :  { %2967 = vmatprep.mubr.msk.f32.mxu0 %vm286_vm10, %v3716_v56  ;;  %3139 = vmatpush3.bf16.msk.msra.mxu0 %vm3496_vm8, %v3134_v59  ;;  %v3277_v56 = vpop.permute.xlu1 %3276  ;;  %v3909_v59 = vld [vmem:[#allocation3 + $0x40] sm:$0xff] }
 0x52f   :  { %v3279_v51 = vunpack.i.h.bf16 %v3277_v56  ;;  %v3278_v8 = vunpack.i.l.bf16 %v3277_v56 }
 0x531   :  { %2968 = vmatmul.mubr.msk.f32.gmra.mrb[8].mxu0 %vm286_vm10, %v3712_v53  ;;  %v3148_v15 = vpack.c.bf16 %v3279_v51, %v3278_v8 }
 0x532   :  { %2990 = vmatprep.mubr.msk.f32.mxu0 %vm286_vm10, %v3738_v27 }
 0x533   :  { %3150 = vmatprep.subr.msk.bf16.mxu0 %vm3496_vm8, %v3148_v15 }
 0x535   :  { %2991 = vmatmul.mubr.msk.f32.vlgmr.msra.gmra.mrb[10].mxu0 %vm286_vm10, %v3744_v35 }
 0x536   :  { %3153 = vmatpush3.bf16.msk.msra.mxu0 %vm3496_vm8, %v3148_v15  ;;  %v1767_v15 = vrot.slane %v3657_v21, 1 }
 0x5e9   :  { %v3843_v14 = vpop.f32.mrb[10].mxu1 }
 0x5ea   :  { %v3845_v47 = vpop.f32.mrb[11].mxu1 }
 0x5ed   :  { %v3847_v60 = vpop.f32.mrb[12].mxu1 }
 0x5ee   :  { %v3849_v53 = vpop.f32.mrb[13].mxu1 }
 0x5f5   :  { %v3005_v27 = vpop.f32.mrb[14].mxu1 }
 0x5f6   :  { %v1368_v35 = vadd.f32 %v3005_v27, %v1286_v42  ;;  %v1362_v19 = vpop.f32.mrb[15].mxu1 }
 0x5f7   :  { %v1363_v48 = vadd.f32 %v1362_v19, %v1286_v42  ;;  %v3905_v42 = vpack.i.bf16 %v3659_v24, %v1498_v41  ;;  %v3911_v24 = vld [vmem:[#allocation3 + $0x50] sm:$0xff]  ;;  %v1768_v19 = vrot.slane %v3909_v59, 1 }
 0x5f8   :  { %v3855_v52 = vmax.f32 %v1368_v35, 0.0 }
 0x5f9   :  { %v3857_v54 = vmax.f32 %v1363_v48, 0.0  ;;  %v1770_v48 = vrot.slane %v3911_v24, 1 }
 0x5fa   :  { %1389 = vrot.lane.b32.xlu1 %v3855_v52, %s3363_s28  ;;  %v1380_v55 = vrot.slane %v3855_v52, 1  ;;  %v1374_v11 = vrot.slane %v3855_v52, 7 }
 0x5fb   :  { %1387 = vrot.lane.b32.xlu0 %v3857_v54, %s3363_s28  ;;  %v1379_v57 = vrot.slane %v3857_v54, 1  ;;  %v1373_v12 = vrot.slane %v3857_v54, 7 }
 0x5fd   :  { %v1382_v58 = vsel %vm206_vm3, %v1380_v55, %v1379_v57  ;;  %v1381_v61 = vsel %vm206_vm3, %v1379_v57, %v1380_v55  ;;  %v1375_v16 = vsel %vm169_vm2, %v1373_v12, %v1374_v11  ;;  %v1376_v23 = vsel %vm169_vm2, %v1374_v11, %v1373_v12 }
 0x5fe   :  { %v1384_v62 = vsel %vm1238_vm14, %v1382_v58, 0.0  ;;  %v1383_v63 = vsel %vm1238_vm14, %v1381_v61, 0.0  ;;  %v1378_v25 = vsel %vm178_vm6, %v1375_v16, 0.0  ;;  %v1377_v29 = vsel %vm178_vm6, %v1376_v23, 0.0 }
 0x5ff   :  { %1397 = vrot.lane.b32.xlu1 %v1384_v62, %s3365_s0  ;;  %1395 = vrot.lane.b32.xlu0 %v1383_v63, %s3365_s0  ;;  %v1769_v62 = vsel %vm1766_vm1, %v1767_v15, %v1768_v19  ;;  %v1771_v63 = vsel %vm1766_vm1, %v1768_v19, %v1770_v48  ;;  %v1660_v15 = vld [vmem:[#allocation3 + $0x60] sm:$0x3] }
 0x600   :  { %v3875_v0 = vpop.f32.mrb[6].mxu0  ;;  %v3290_v12 = vpack.i.bf16 %v1771_v63, %v1769_v62  ;;  %v3335_v62 = vld [vmem:[%s4276_s2] ss:$0 sm:$0xff] }
 0x601   :  { %v3877_v2 = vpop.f32.mrb[7].mxu0 }
 0x603   :  { %1410 = vrot.lane.b32.xlu0 %v3482_v32, %s3377_s20  ;;  %3281 = vrot.lane.b32.xlu1 %v3905_v42, %s3378_s21 }
 0x604   :  { %v3880_v4 = vpop.f32.mrb[8].mxu0 }
 0x605   :  { %v3882_v7 = vpop.f32.mrb[9].mxu0 }
 0x608   :  { %v3884_v9 = vpop.f32.mrb[10].mxu0 }
 0x609   :  { %v3886_v10 = vpop.f32.mrb[11].mxu0 }
 0x66c   :  { %v1390_v13 = vpop.permute.xlu1 %1389 }
 0x66d   :  { %v1388_v17 = vpop.permute.xlu0 %1387  ;;  %v1402_v30 = vsel %vm61_vm0, %v1378_v25, %v1390_v13 }
 0x66e   :  { %v1401_v31 = vsel %vm61_vm0, %v1377_v29, %v1388_v17 }
 0x671   :  { %v1398_v33 = vpop.permute.xlu1 %1397  ;;  %v1396_v37 = vpop.permute.xlu0 %1395 }
 0x672   :  { %v1404_v38 = vsel %vm271_vm9, %v1402_v30, %v1398_v33  ;;  %v1403_v39 = vsel %vm271_vm9, %v1401_v31, %v1396_v37 }
 0x673   :  { %3010 = vmatprep.mubr.msk.f32.mxu0 %vm286_vm10, %v1403_v39 }
 0x674   :  { %3011 = vmatmul.mubr.msk.f32.vlgmr.msra.gmra.mrb[12].mxu0 %vm286_vm10, %v1404_v38 }
 0x675   :  { %v3282_v43 = vpop.permute.xlu1 %3281  ;;  %v1411_v5 = vpop.permute.xlu0 %1410 }
 0x676   :  { %v3284_v44 = vunpack.i.h.bf16 %v3282_v43  ;;  %v3283_v45 = vunpack.i.l.bf16 %v3282_v43 }
 0x678   :  { %v3154_v46 = vpack.c.bf16 %v3284_v44, %v3283_v45 }
 0x67a   :  { %3155 = vmatprep.subr.bf16.mxu0 %v3154_v46 }
 0x67b   :  { %3157 = vmatpush3.bf16.msra.mxu0 %v3154_v46 }
 0x747   :  { %v3012_v20 = vpop.f32.mrb[12].mxu0 }
 0x748   :  { %v1493_v6 = vadd.f32 %v3012_v20, %v1411_v5  ;;  %v1487_v49 = vpop.f32.mrb[13].mxu0 }
 0x749   :  { %v1488_v3 = vadd.f32 %v1487_v49, %v1411_v5 }
 0x74a   :  { %v1497_v50 = vmax.f32 %v1493_v6, 0.0 }
 0x74b   :  { %v1496_v56 = vmax.f32 %v1488_v3, 0.0 }
 0x74c   :  { %v1502_v51 = vrot.slane %v1497_v50, 7  ;;  %1517 = vrot.lane.b32.xlu1 %v1497_v50, %s3365_s0  ;;  %v1508_v8 = vrot.slane %v1497_v50, 1 }
 0x74d   :  { %v1501_v27 = vrot.slane %v1496_v56, 7  ;;  %1515 = vrot.lane.b32.xlu0 %v1496_v56, %s3365_s0  ;;  %v1507_v35 = vrot.slane %v1496_v56, 1 }
 0x74f   :  { %v1509_v55 = vsel %vm206_vm3, %v1507_v35, %v1508_v8  ;;  %v1510_v57 = vsel %vm206_vm3, %v1508_v8, %v1507_v35  ;;  %v1503_v58 = vsel %vm169_vm2, %v1501_v27, %v1502_v51  ;;  %v1504_v21 = vsel %vm169_vm2, %v1502_v51, %v1501_v27 }
 0x750   :  { %1541 = vrot.lane.b32.xlu1 %v3655_v18, %s3378_s21  ;;  %v1511_v61 = vsel %vm1238_vm14, %v1509_v55, 0.0  ;;  %v1512_v11 = vsel %vm1238_vm14, %v1510_v57, 0.0  ;;  %v1505_v16 = vsel %vm178_vm6, %v1504_v21, 0.0  ;;  %vm1683_vm14 = vcmask 1040384  }
 0x751   :  { %1523 = vrot.lane.b32.xlu0 %v1511_v61, %s3362_s23 }
 0x754   :  { %1546 = vrot.lane.b32.xlu1 %v3482_v32, %s3378_s21 }
 0x755   :  { %1525 = vrot.lane.b32.xlu0 %v1512_v11, %s3362_s23 }
 0x758   :  { %3291 = vrot.lane.b32.xlu1 %v3290_v12, %s3379_s22 }
 0x759   :  { %3286 = vrot.lane.b32.xlu0 %v3905_v42, %s3379_s22 }
 0x75c   :  { %1632 = vrot.lane.b32.xlu1 %v1496_v56, %s3363_s28 }
 0x75d   :  { %1121 = vrot.lane.b32.xlu0 %v3482_v32, %s3375_s18  ;;  %v1506_v32 = vsel %vm178_vm6, %v1503_v58, 0.0 }
 0x761   :  { %1634 = vrot.lane.b32.xlu0 %v1497_v50, %s3363_s28 }
 0x765   :  { %3296 = vrot.lane.b32.xlu0 %v3664_v26, %s3379_s22 }
 0x7be   :  { %v1518_v36 = vpop.permute.xlu1 %1517 }
 0x7bf   :  { %v1516_v13 = vpop.permute.xlu0 %1515  ;;  %v1530_v31 = vsel %vm271_vm9, %v1506_v32, %v1518_v36 }
 0x7c0   :  { %v1529_v23 = vsel %vm271_vm9, %v1505_v16, %v1516_v13 }
 0x7c2   :  { %v1542_v17 = vpop.permute.xlu1 %1541 }
 0x7c3   :  { %v1524_v25 = vpop.permute.xlu0 %1523  ;;  %3017 = vmatprep.subr.mxu0 %v1542_v17 }
 0x7c4   :  { %v1532_v29 = vsel %vm1531_vm13, %v1529_v23, %v1524_v25  ;;  %3018 = vmatpush3.msra.mxu0 %v1542_v17 }
 0x7c5   :  { %3019 = vmatprep.mubr.msk.f32.mxu0 %vm954_vm15, %v1532_v29 }
 0x7c6   :  { %v1547_v30 = vpop.permute.xlu1 %1546 }
 0x7c7   :  { %v1526_v33 = vpop.permute.xlu0 %1525 }
 0x7c8   :  { %v1533_v37 = vsel %vm1531_vm13, %v1530_v31, %v1526_v33  ;;  %vm3960_vm13 = vmpackc.low %vm1683_vm14, %vm3366_vm7  ;;  %vm1676_vm7 = vcmask 203776   ;;  %vm2125_vm14 = vcmask 588800  }
 0x7c9   :  { %3020 = vmatmul.mubr.msk.f32.vlgmr.msra.gmra.mrb[14].mxu0 %vm954_vm15, %v1533_v37 }
 0x7ca   :  { %v3292_v38 = vpop.permute.xlu1 %3291 }
 0x7cb   :  { %v3294_v39 = vunpack.i.h.bf16 %v3292_v38  ;;  %v3293_v41 = vunpack.i.l.bf16 %v3292_v38  ;;  %v3287_v43 = vpop.permute.xlu0 %3286 }
 0x7cc   :  { %v3289_v44 = vunpack.i.h.bf16 %v3287_v43  ;;  %v3288_v45 = vunpack.i.l.bf16 %v3287_v43 }
 0x7cd   :  { %v3168_v46 = vpack.c.bf16 %v3294_v39, %v3293_v41 }
 0x7ce   :  { %v3158_v5 = vpack.c.bf16 %v3289_v44, %v3288_v45  ;;  %v1633_v63 = vpop.permute.xlu1 %1632 }
 0x7cf   :  { %v1122_v20 = vpop.permute.xlu0 %1121  ;;  %3169 = vmatprep.subr.bf16.mxu0 %v3168_v46  ;;  %v1646_v12 = vsel %vm61_vm0, %v3857_v54, %v1633_v63 }
 0x7d0   :  { %v1199_v6 = vadd.f32 %v3886_v10, %v1122_v20  ;;  %v1204_v49 = vadd.f32 %v3884_v9, %v1122_v20  ;;  %3159 = vmatprep.subr.bf16.mxu1 %v3158_v5  ;;  %3171 = vmatpush3.bf16.msra.mxu0 %v3168_v46  ;;  %v1772_v9 = vrot.slane %v1660_v15, 1 }
 0x7d1   :  { %3161 = vmatpush3.bf16.msra.mxu1 %v3158_v5 }
 0x7d2   :  { %v1773_v58 = vsel %vm1766_vm1, %v1770_v48, %v1772_v9  ;;  %vm2081_vm1 = vcmask 392192  }
 0x7d3   :  { %v1635_v3 = vpop.permute.xlu0 %1634  ;;  %v3300_v61 = vpack.i.bf16 %v1772_v9, %v1773_v58 }
 0x7d4   :  { %v1647_v48 = vsel %vm61_vm0, %v3855_v52, %v1635_v3 }
 0x7d7   :  { %v3297_v50 = vpop.permute.xlu0 %3296 }
 0x7d8   :  { %v3299_v56 = vunpack.i.h.bf16 %v3297_v50  ;;  %v3298_v51 = vunpack.i.l.bf16 %v3297_v50  ;;  %v2022_v50 = vld [vmem:[#allocation3 + $0x60] sm:$0xff] }
 0x7da   :  { %v3162_v8 = vpack.c.bf16 %v3299_v56, %v3298_v51  ;;  %v2023_v56 = vld [vmem:[#allocation3 + $0x70] sm:$0xff] }
 0x7db   :  { %v3320_v51 = vpack.i.bf16 %v2023_v56, %v2022_v50 }
 0x7dc   :  { %3164 = vmatprep.subr.msk.bf16.mxu1 %vm3960_vm13, %v3162_v8 }
 0x7dd   :  { %3167 = vmatpush3.bf16.msk.msra.mxu1 %vm3960_vm13, %v3162_v8  ;;  %v2024_v8 = vld [vmem:[#allocation3 + $0x80] sm:$0xff] }
 0x89c   :  { %v3021_v10 = vpop.f32.mrb[14].mxu0 }
 0x89d   :  { %v1627_v35 = vadd.f32 %v3021_v10, %v1547_v30  ;;  %v1621_v19 = vpop.f32.mrb[15].mxu0 }
 0x89e   :  { %v1622_v55 = vadd.f32 %v1621_v19, %v1547_v30 }
 0x89f   :  { %v1631_v57 = vmax.f32 %v1627_v35, 0.0 }
 0x8a0   :  { %v1630_v21 = vmax.f32 %v1622_v55, 0.0 }
 0x8a1   :  { %1642 = vrot.lane.b32.xlu0 %v1631_v57, %s3373_s16 }
 0x8a2   :  { %1640 = vrot.lane.b32.xlu1 %v1630_v21, %s3373_s16 }
 0x8a5   :  { %791 = vrot.lane.b32.xlu0 %v3335_v62, %s3376_s19 }
 0x8a6   :  { %3301 = vrot.lane.b32.xlu1 %v3300_v61, %s3379_s22 }
 0x8aa   :  { %978 = vrot.lane.b32.xlu1 %v3335_v62, %s3371_s14 }
 0x8ae   :  { %1868 = vrot.lane.b32.xlu1 %v3335_v62, %s3379_s22 }
 0x913   :  { %v1643_v11 = vpop.permute.xlu0 %1642 }
 0x914   :  { %v1649_v36 = vsel %vm286_vm10, %v1647_v48, %v1643_v11  ;;  %v1641_v13 = vpop.permute.xlu1 %1640 }
 0x915   :  { %v1651_v16 = vadd.f32 %v1649_v36, %v1204_v49  ;;  %v1648_v17 = vsel %vm286_vm10, %v1646_v12, %v1641_v13 }
 0x916   :  { %v1650_v23 = vadd.f32 %v1648_v17, %v1199_v6 }
 0x917   :  { %v1653_v32 = vmax.f32 %v1651_v16, 0.0  ;;  %v792_v52 = vpop.permute.xlu0 %791 }
 0x918   :  { %v1652_v25 = vmax.f32 %v1650_v23, 0.0  ;;  %v3302_v29 = vpop.permute.xlu1 %3301  ;;  %v875_v43 = vadd.f32 %v3877_v2, %v792_v52  ;;  %v880_v44 = vadd.f32 %v3875_v0, %v792_v52  ;;  %v885_v45 = vadd.f32 %v3882_v7, %v792_v52 }
 0x919   :  { %v3304_v30 = vunpack.i.h.bf16 %v3302_v29  ;;  %v3303_v31 = vunpack.i.l.bf16 %v3302_v29  ;;  %v890_v46 = vadd.f32 %v3880_v4, %v792_v52  ;;  %v3315_v7 = vpack.i.bf16 %v3911_v24, %v3909_v59 }
 0x91a   :  { %3030 = vmatprep.mubr.msk.f32.mxu1 %vm1676_vm7, %v1652_v25  ;;  %3041 = vmatprep.mubr.msk.f32.mxu0 %vm1676_vm7, %v1652_v25 }
 0x91b   :  { %v3172_v33 = vpack.c.bf16 %v3304_v30, %v3303_v31  ;;  %3031 = vmatmul.mubr.msk.f32.vlgmr.msra.gmra.mrb[16].mxu1 %vm1676_vm7, %v1653_v32 }
 0x91c   :  { %v979_v54 = vpop.permute.xlu1 %978 }
 0x91d   :  { %v1063_v37 = vadd.f32 %v3845_v47, %v979_v54  ;;  %v1068_v38 = vadd.f32 %v3843_v14, %v979_v54  ;;  %v1073_v39 = vadd.f32 %v3849_v53, %v979_v54  ;;  %v1078_v41 = vadd.f32 %v3847_v60, %v979_v54  ;;  %3174 = vmatprep.subr.msk.bf16.mxu0 %vm3960_vm13, %v3172_v33 }
 0x91e   :  { %3177 = vmatpush3.bf16.msk.msra.mxu0 %vm3960_vm13, %v3172_v33 }
 0x91f   :  { %v1081_v47 = vmax.f32 %v1063_v37, 0.0  ;;  %v1082_v14 = vmax.f32 %v1068_v38, 0.0  ;;  %v1083_v5 = vmax.f32 %v1073_v39, 0.0  ;;  %v1084_v53 = vmax.f32 %v1078_v41, 0.0 }
 0x920   :  { %v1869_v15 = vpop.permute.xlu1 %1868 }
 0x921   :  { %3042 = vmatmul.mubr.msk.f32.vlgmr.msra.gmra.mrb[16].mxu0 %vm1676_vm7, %v1653_v32  ;;  %v1086_v60 = vadd.f32 %v1082_v14, %v880_v44  ;;  %v1085_v20 = vadd.f32 %v1081_v47, %v875_v43  ;;  %v1088_v6 = vadd.f32 %v1084_v53, %v890_v46  ;;  %v1087_v49 = vadd.f32 %v1083_v5, %v885_v45 }
 0x923   :  { %v1090_v2 = vmax.f32 %v1086_v60, 0.0  ;;  %v1089_v3 = vmax.f32 %v1085_v20, 0.0  ;;  %v1092_v0 = vmax.f32 %v1088_v6, 0.0  ;;  %v1091_v4 = vmax.f32 %v1087_v49, 0.0  ;;  %v4045_v20 = vld [vmem:[%s4276_s2] ss:$0 sm:$0xff] }
 0x925   :  { %1881 = vrot.lane.b32.xlu1 %v1090_v2, %s3373_s16  ;;  %1879 = vrot.lane.b32.xlu0 %v1089_v3, %s3373_s16 }
 0x929   :  { %1885 = vrot.lane.b32.xlu1 %v1092_v0, %s3373_s16  ;;  %1883 = vrot.lane.b32.xlu0 %v1091_v4, %s3373_s16 }
 0x92d   :  { %3306 = vrot.lane.b32.xlu0 %v3905_v42, %s3370_s13  ;;  %3311 = vrot.lane.b32.xlu1 %v3664_v26, %s3370_s13 }
 0x931   :  { %3316 = vrot.lane.b32.xlu0 %v3315_v7, %s3370_s13  ;;  %3321 = vrot.lane.b32.xlu1 %v3320_v51, %s3370_s13 }
 0x935   :  { %2111 = vrot.lane.b32.xlu1 %v2024_v8, %s3370_s13 }
 0x997   :  { %v1880_v27 = vpop.permute.xlu0 %1879  ;;  %v1882_v9 = vpop.permute.xlu1 %1881 }
 0x99b   :  { %v1884_v10 = vpop.permute.xlu0 %1883  ;;  %v1886_v35 = vpop.permute.xlu1 %1885 }
 0x99f   :  { %v3307_v19 = vpop.permute.xlu0 %3306  ;;  %v3312_v26 = vpop.permute.xlu1 %3311 }
 0x9a0   :  { %v3309_v55 = vunpack.i.h.bf16 %v3307_v19  ;;  %v3308_v57 = vunpack.i.l.bf16 %v3307_v19  ;;  %v3314_v59 = vunpack.i.h.bf16 %v3312_v26  ;;  %v3313_v24 = vunpack.i.l.bf16 %v3312_v26 }
 0x9a2   :  { %v3182_v58 = vpack.c.bf16 %v3309_v55, %v3308_v57  ;;  %v3186_v21 = vpack.c.bf16 %v3314_v59, %v3313_v24 }
 0x9a3   :  { %v3317_v61 = vpop.permute.xlu0 %3316  ;;  %v3322_v48 = vpop.permute.xlu1 %3321 }
 0x9a4   :  { %3183 = vmatprep.subr.bf16.mxu0 %v3182_v58  ;;  %v3319_v62 = vunpack.i.h.bf16 %v3317_v61  ;;  %v3318_v63 = vunpack.i.l.bf16 %v3317_v61  ;;  %v3324_v11 = vunpack.i.h.bf16 %v3322_v48  ;;  %v3323_v12 = vunpack.i.l.bf16 %v3322_v48 }
 0x9a5   :  { %3185 = vmatpush3.bf16.msra.mxu0 %v3182_v58 }
 0x9a6   :  { %3187 = vmatprep.subr.bf16.mxu0 %v3186_v21  ;;  %v3190_v36 = vpack.c.bf16 %v3319_v62, %v3318_v63  ;;  %v3194_v16 = vpack.c.bf16 %v3324_v11, %v3323_v12 }
 0x9a7   :  { %v2112_v25 = vpop.permute.xlu1 %2111 }
 0x9a9   :  { %3189 = vmatpush3.bf16.msra.mxu0 %v3186_v21 }
 0x9aa   :  { %3191 = vmatprep.subr.bf16.mxu0 %v3190_v36 }
 0x9ad   :  { %3193 = vmatpush3.bf16.msra.mxu0 %v3190_v36 }
 0x9ae   :  { %3195 = vmatprep.subr.bf16.mxu0 %v3194_v16 }
 0x9b1   :  { %3197 = vmatpush3.bf16.msra.mxu0 %v3194_v16 }
 0x9b2   :  { %3072 = vmatprep.subr.mxu0 %v2112_v25 }
 0x9b5   :  { %3073 = vmatpush3.msra.mxu0 %v2112_v25 }
 0x9ee   :  { %v3032_v13 = vpop.f32.mrb[16].mxu1 }
 0x9ef   :  { %1762 = vst [vmem:[#allocation2 + $0x10] ss:$2 sm:$0xff] %v3032_v13  ;;  %v1752_v17 = vpop.f32.mrb[17].mxu1 }
 0x9f0   :  { %1761 = vst [vmem:[#allocation2] ss:$2 sm:$0xff] %v1752_v17  ;;  %v2227_v17 = vld [vmem:[#allocation3] sm:$0x3f] }
 0x9f4   :  { %v3043_v23 = vpop.f32.mrb[16].mxu0 }
 0x9f5   :  { %1863 = vst [vmem:[#allocation2 + $0x11] ss:$2 sm:$0xff] %v3043_v23  ;;  %v1853_v29 = vpop.f32.mrb[17].mxu0 }
 0x9f6   :  { %1862 = vst [vmem:[#allocation2 + $0x1] ss:$2 sm:$0xff] %v1853_v29 }
 0x9fc   :  { %v1867_v32 = vld [vmem:[#allocation2 + $0x18] sm:$0xff]  ;;  %v1866_v30 = vld [vmem:[#allocation2 + $0x10] sm:$0xff] }
 0x9fd   :  { %v1874_v31 = vadd.f32 %v1869_v15, %v1867_v32  ;;  %v1873_v52 = vadd.f32 %v1869_v15, %v1866_v30  ;;  %v1864_v33 = vld [vmem:[#allocation2] sm:$0xff]  ;;  %v1865_v54 = vld [vmem:[#allocation2 + $0x8] sm:$0xff] }
 0x9fe   :  { %v1871_v37 = vadd.f32 %v1869_v15, %v1864_v33  ;;  %v1872_v38 = vadd.f32 %v1869_v15, %v1865_v54 }
 0x9ff   :  { %v4016_v39 = vsel %vm286_vm10, %v1874_v31, %v1886_v35  ;;  %v4019_v41 = vsel %vm286_vm10, %v1873_v52, %v1884_v10 }
 0xa00   :  { %2055 = vrot.lane.b32.xlu0 %v4016_v39, %s3374_s17  ;;  %2053 = vrot.lane.b32.xlu1 %v4019_v41, %s3374_s17  ;;  %v1891_v43 = vsel %vm286_vm10, %v1871_v37, %v1880_v27  ;;  %v4027_v44 = vsel %vm286_vm10, %v1872_v38, %v1882_v9  ;;  %v2040_v45 = vrot.slane %v4016_v39, 1  ;;  %v2039_v46 = vrot.slane %v4019_v41, 1 }
 0xa01   :  { %3050 = vmatprep.mubr.msk.f32.mxu1 %vm954_vm15, %v1891_v43  ;;  %v2037_v47 = vrot.slane %v1891_v43, 1  ;;  %v2038_v14 = vrot.slane %v4027_v44, 1  ;;  %v2028_v3 = vrot.slane %v4016_v39, 7  ;;  %v2025_v0 = vrot.slane %v1891_v43, 7 }
 0xa02   :  { %v2041_v5 = vsel %vm206_vm3, %v2039_v46, %v2040_v45  ;;  %v2027_v51 = vrot.slane %v4019_v41, 7  ;;  %v2026_v8 = vrot.slane %v4027_v44, 7 }
 0xa03   :  { %v2043_v53 = vsel %vm206_vm3, %v2037_v47, %v2038_v14  ;;  %v2042_v60 = vsel %vm206_vm3, %v2038_v14, %v2039_v46  ;;  %v2044_v49 = vsel %vm206_vm3, %v2040_v45, %v2037_v47  ;;  %v2032_v56 = vsel %vm169_vm2, %v2028_v3, %v2025_v0 }
 0xa04   :  { %2051 = vrot.lane.b32.xlu1 %v4027_v44, %s3374_s17  ;;  %2049 = vrot.lane.b32.xlu0 %v1891_v43, %s3374_s17  ;;  %v2046_v6 = vsel %vm220_vm4, %v2042_v60, 0.0  ;;  %v2048_v2 = vsel %vm222_vm5, %v2044_v49, 0.0  ;;  %v2030_v9 = vsel %vm169_vm2, %v2026_v8, %v2027_v51  ;;  %v2031_v35 = vsel %vm169_vm2, %v2025_v0, %v2026_v8 }
 0xa05   :  { %v2035_v26 = vsel %vm178_vm6, %v2030_v9, 0.0  ;;  %v2029_v21 = vsel %vm169_vm2, %v2027_v51, %v2028_v3 }
 0xa08   :  { %2069 = vrot.lane.b32.xlu1 %v2041_v5, %s3380_s25  ;;  %2065 = vrot.lane.b32.xlu0 %v2043_v53, %s3380_s25 }
 0xa0c   :  { %2067 = vrot.lane.b32.xlu0 %v2046_v6, %s3380_s25  ;;  %2122 = vrot.lane.b32.xlu1 %v4045_v20, %s3370_s13 }
 0xa10   :  { %2071 = vrot.lane.b32.xlu0 %v2048_v2, %s3380_s25  ;;  %1911 = vrot.lane.b32.xlu1 %v3655_v18, %s3381_s1  ;;  %v2033_v18 = vsel %vm178_vm6, %v2032_v56, 0.0 }
 0xa14   :  { %3326 = vrot.lane.b32.xlu0 %v3905_v42, %s3381_s1  ;;  %2293 = vrot.lane.b32.xlu1 %v2227_v17, %s3363_s28 }
 0xa72   :  { %v2056_v4 = vpop.permute.xlu0 %2055  ;;  %v2054_v7 = vpop.permute.xlu1 %2053 }
 0xa73   :  { %v2079_v59 = vsel %vm954_vm15, %v2035_v26, %v2054_v7  ;;  %v2080_v61 = vsel %vm954_vm15, %v2029_v21, %v2056_v4 }
 0xa76   :  { %v2050_v50 = vpop.permute.xlu0 %2049  ;;  %v2052_v15 = vpop.permute.xlu1 %2051 }
 0xa77   :  { %v2077_v42 = vsel %vm954_vm15, %v2033_v18, %v2050_v50  ;;  %v2078_v55 = vsel %vm954_vm15, %v2031_v35, %v2052_v15 }
 0xa7a   :  { %v2066_v27 = vpop.permute.xlu0 %2065  ;;  %v2070_v19 = vpop.permute.xlu1 %2069 }
 0xa7b   :  { %v2082_v10 = vsel %vm2081_vm1, %v2077_v42, %v2066_v27  ;;  %v2084_v58 = vsel %vm2081_vm1, %v2079_v59, %v2070_v19 }
 0xa7c   :  { %3074 = vmatprep.mubr.msk.f32.mxu0 %vm2125_vm14, %v2082_v10 }
 0xa7e   :  { %v2068_v57 = vpop.permute.xlu0 %2067  ;;  %v2123_v48 = vpop.permute.xlu1 %2122 }
 0xa7f   :  { %v2083_v24 = vsel %vm2081_vm1, %v2078_v55, %v2068_v57 }
 0xa80   :  { %3075 = vmatmul.mubr.msk.f32.vlgmr.msra.gmra.mrb[18].mxu0 %vm2125_vm14, %v2083_v24 }
 0xa81   :  { %3077 = vmatprep.mubr.msk.f32.mxu0 %vm2125_vm14, %v2084_v58 }
 0xa82   :  { %v2072_v62 = vpop.permute.xlu0 %2071  ;;  %v1912_v16 = vpop.permute.xlu1 %1911 }
 0xa83   :  { %v2085_v63 = vsel %vm2081_vm1, %v2080_v61, %v2072_v62 }
 0xa84   :  { %3078 = vmatmul.mubr.msk.f32.gmra.mrb[20].mxu0 %vm2125_vm14, %v2085_v63 }
 0xa86   :  { %v3327_v11 = vpop.permute.xlu0 %3326  ;;  %v2294_v23 = vpop.permute.xlu1 %2293 }
 0xa87   :  { %v3329_v12 = vunpack.i.h.bf16 %v3327_v11  ;;  %v3328_v36 = vunpack.i.l.bf16 %v3327_v11 }
 0xa89   :  { %v3178_v13 = vpack.c.bf16 %v3329_v12, %v3328_v36  ;;  %v2401_v12 = vld [vmem:[#allocation3 + $0x8] sm:$0xff]  ;;  %v2402_v36 = vld [vmem:[#allocation3 + $0x18] sm:$0xf] }
 0xa8a   :  { %v3330_v22 = vpack.i.bf16 %v2402_v36, %v2401_v12 }
 0xa8b   :  { %3179 = vmatprep.subr.bf16.mxu1 %v3178_v13 }
 0xa8c   :  { %3181 = vmatpush3.bf16.msra.mxu1 %v3178_v13  ;;  %v3198_v13 = vpack.c.bf16 %v2402_v36, %v2401_v12 }
 0xa8d   :  { %3048 = vmatprep.subr.mxu1 %v1912_v16 }
 0xa90   :  { %3049 = vmatpush3.msra.mxu1 %v1912_v16 }
 0xa91   :  { %3051 = vmatmul.mubr.msk.f32.vlgmr.msra.gmra.mrb[18].mxu1 %vm954_vm15, %v4027_v44  ;;  %3080 = vmatprep.subr.msk.mxu1 %vm475_vm11, %v2294_v23 }
 0xa92   :  { %3053 = vmatprep.mubr.msk.f32.mxu1 %vm954_vm15, %v4019_v41  ;;  %3081 = vmatpush3.msk.msra.mxu1 %vm475_vm11, %v2294_v23  ;;  %vm4283_vm11 = vcmask 48128  }
 0xa93   :  { %vm4285_vm13 = vmmov %vm4283_vm11  ;;  %3200 = vmatprep.subr.msk.bf16.mxu1 %vm3496_vm8, %v3198_v13 }
 0xa94   :  { %vm4286_vm7 = vmmov %vm4283_vm11 }
 0xa95   :  { %3054 = vmatmul.mubr.msk.f32.gmra.mrb[20].mxu1 %vm954_vm15, %v4016_v39  ;;  %vm4284_vm15 = vmmov %vm4283_vm11 }
 0xb53   :  { %v3076_v25 = vpop.f32.mrb[18].mxu0 }
 0xb54   :  { %v2210_v29 = vadd.f32 %v3076_v25, %v2123_v48  ;;  %v2204_v32 = vpop.f32.mrb[19].mxu0 }
 0xb55   :  { %v2205_v30 = vadd.f32 %v2204_v32, %v2123_v48 }
 0xb56   :  { %v4095_v31 = vmax.f32 %v2210_v29, 0.0 }
 0xb57   :  { %v4097_v52 = vmax.f32 %v2205_v30, 0.0  ;;  %v3079_v33 = vpop.f32.mrb[20].mxu0 }
 0xb58   :  { %v2220_v54 = vadd.f32 %v3079_v33, %v2123_v48  ;;  %2258 = vrot.lane.b32.xlu1 %v4095_v31, %s3368_s11  ;;  %v2214_v37 = vpop.f32.mrb[21].mxu0  ;;  %v2241_v38 = vrot.slane %v4095_v31, 1  ;;  %v2229_v10 = vrot.slane %v4095_v31, 7 }
 0xb59   :  { %v2215_v39 = vadd.f32 %v2214_v37, %v2123_v48  ;;  %2256 = vrot.lane.b32.xlu0 %v4097_v52, %s3368_s11  ;;  %v2240_v41 = vrot.slane %v4097_v52, 1  ;;  %v2228_v7 = vrot.slane %v4097_v52, 7 }
 0xb5a   :  { %v4105_v43 = vmax.f32 %v2220_v54, 0.0 }
 0xb5b   :  { %v4107_v44 = vmax.f32 %v2215_v39, 0.0  ;;  %v2246_v45 = vsel %vm206_vm3, %v2240_v41, %v2241_v38  ;;  %v2234_v26 = vsel %vm169_vm2, %v2228_v7, %v2229_v10 }
 0xb5c   :  { %v2243_v46 = vrot.slane %v4105_v43, 1  ;;  %v2231_v4 = vrot.slane %v4105_v43, 7 }
 0xb5d   :  { %2260 = vrot.lane.b32.xlu1 %v4107_v44, %s3368_s11  ;;  %2272 = vrot.lane.b32.xlu0 %v2246_v45, %s3363_s28  ;;  %v2242_v47 = vrot.slane %v4107_v44, 1  ;;  %v2230_v42 = vrot.slane %v4107_v44, 7 }
 0xb5e   :  { %v2247_v49 = vsel %vm206_vm3, %v2243_v46, %v2240_v41  ;;  %v2235_v51 = vsel %vm169_vm2, %v2231_v4, %v2228_v7 }
 0xb5f   :  { %v2244_v14 = vsel %vm206_vm3, %v2242_v47, %v2243_v46  ;;  %v2245_v5 = vsel %vm206_vm3, %v2241_v38, %v2242_v47  ;;  %v2251_v3 = vsel %vm222_vm5, %v2247_v49, 0.0  ;;  %v2236_v8 = vsel %vm178_vm6, %v2235_v51, 0.0 }
 0xb60   :  { %v2249_v60 = vsel %vm220_vm4, %v2245_v5, 0.0  ;;  %v2233_v19 = vsel %vm169_vm2, %v2229_v10, %v2230_v42  ;;  %v2232_v62 = vsel %vm169_vm2, %v2230_v42, %v2231_v4 }
 0xb61   :  { %2276 = vrot.lane.b32.xlu1 %v2244_v14, %s3363_s28  ;;  %2262 = vrot.lane.b32.xlu0 %v4105_v43, %s3368_s11  ;;  %v2238_v59 = vsel %vm178_vm6, %v2233_v19, 0.0 }
 0xb64   :  { %v4123_v53 = vpop.f32.mrb[18].mxu1 }
 0xb65   :  { %2274 = vrot.lane.b32.xlu0 %v2249_v60, %s3363_s28  ;;  %v4128_v6 = vpop.f32.mrb[19].mxu1  ;;  %2295 = vrot.lane.b32.xlu1 %v4045_v20, %s3363_s28 }
 0xb68   :  { %v4134_v2 = vpop.f32.mrb[20].mxu1 }
 0xb69   :  { %2278 = vrot.lane.b32.xlu0 %v2251_v3, %s3363_s28  ;;  %v4139_v0 = vpop.f32.mrb[21].mxu1 }
 0xbca   :  { %v2259_v50 = vpop.permute.xlu1 %2258 }
 0xbcb   :  { %v2257_v56 = vpop.permute.xlu0 %2256  ;;  %v2285_v57 = vsel %vm447_vm12, %v2234_v26, %v2259_v50 }
 0xbcc   :  { %v2284_v15 = vsel %vm447_vm12, %v2236_v8, %v2257_v56 }
 0xbcf   :  { %v2273_v18 = vpop.permute.xlu0 %2272  ;;  %v2261_v27 = vpop.permute.xlu1 %2260 }
 0xbd0   :  { %v2288_v9 = vsel %vm61_vm0, %v2284_v15, %v2273_v18  ;;  %v2286_v58 = vsel %vm447_vm12, %v2238_v59, %v2261_v27 }
 0xbd1   :  { %3082 = vmatprep.mubr.msk.f32.mxu1 %vm4283_vm11, %v2288_v9 }
 0xbd3   :  { %v2263_v35 = vpop.permute.xlu0 %2262  ;;  %v2277_v55 = vpop.permute.xlu1 %2276 }
 0xbd4   :  { %v2290_v61 = vsel %vm61_vm0, %v2286_v58, %v2277_v55  ;;  %v2287_v63 = vsel %vm447_vm12, %v2232_v62, %v2263_v35 }
 0xbd7   :  { %v2275_v24 = vpop.permute.xlu0 %2274  ;;  %v2296_v16 = vpop.permute.xlu1 %2295 }
 0xbd8   :  { %v2289_v21 = vsel %vm61_vm0, %v2285_v57, %v2275_v24 }
 0xbd9   :  { %3083 = vmatmul.mubr.msk.f32.vlgmr.msra.gmra.mrb[22].mxu1 %vm4284_vm15, %v2289_v21 }
 0xbda   :  { %3085 = vmatprep.mubr.msk.f32.mxu1 %vm4285_vm13, %v2290_v61  ;;  %3203 = vmatpush3.bf16.msk.msra.mxu1 %vm3496_vm8, %v3198_v13 }
 0xbdb   :  { %v2279_v48 = vpop.permute.xlu0 %2278 }
 0xbdc   :  { %v2291_v11 = vsel %vm61_vm0, %v2287_v63, %v2279_v48 }
 0xbdd   :  { %3086 = vmatmul.mubr.msk.f32.gmra.mrb[24].mxu1 %vm4286_vm7, %v2291_v11 }
 0xcac   :  { %v3084_v17 = vpop.f32.mrb[22].mxu1 }
 0xcad   :  { %v2384_v23 = vadd.f32 %v3084_v17, %v2296_v16  ;;  %v2378_v25 = vpop.f32.mrb[23].mxu1 }
 0xcae   :  { %v2379_v29 = vadd.f32 %v2378_v25, %v2296_v16 }
 0xcaf   :  { %v2398_v32 = vmax.f32 %v2384_v23, 0.0 }
 0xcb0   :  { %v2397_v30 = vmax.f32 %v2379_v29, 0.0  ;;  %v3087_v33 = vpop.f32.mrb[24].mxu1 }
 0xcb1   :  { %v2394_v54 = vadd.f32 %v3087_v33, %v2296_v16  ;;  %2434 = vrot.lane.b32.xlu1 %v2398_v32, %s3363_s28  ;;  %v2388_v37 = vpop.f32.mrb[25].mxu1  ;;  %v2417_v38 = vrot.slane %v2398_v32, 1  ;;  %v2405_v39 = vrot.slane %v2398_v32, 7 }
 0xcb2   :  { %v2389_v41 = vadd.f32 %v2388_v37, %v2296_v16  ;;  %2432 = vrot.lane.b32.xlu0 %v2397_v30, %s3363_s28  ;;  %v2416_v45 = vrot.slane %v2397_v30, 1  ;;  %v2404_v46 = vrot.slane %v2397_v30, 7 }
 0xcb3   :  { %v4175_v47 = vmax.f32 %v2394_v54, 0.0 }
 0xcb4   :  { %v2399_v14 = vmax.f32 %v2389_v41, 0.0  ;;  %v2422_v5 = vsel %vm206_vm3, %v2416_v45, %v2417_v38  ;;  %v2410_v60 = vsel %vm169_vm2, %v2404_v46, %v2405_v39 }
 0xcb5   :  { %2438 = vrot.lane.b32.xlu1 %v4175_v47, %s3363_s28  ;;  %v2419_v3 = vrot.slane %v4175_v47, 1  ;;  %v2407_v28 = vrot.slane %v4175_v47, 7 }
 0xcb6   :  { %2448 = vrot.lane.b32.xlu0 %v2422_v5, %s3365_s0  ;;  %v2418_v49 = vrot.slane %v2399_v14, 1  ;;  %v2406_v4 = vrot.slane %v2399_v14, 7 }
 0xcb7   :  { %v2423_v51 = vsel %vm206_vm3, %v2419_v3, %v2416_v45  ;;  %v2411_v27 = vsel %vm169_vm2, %v2407_v28, %v2404_v46 }
 0xcb8   :  { %v2421_v7 = vsel %vm206_vm3, %v2417_v38, %v2418_v49  ;;  %v2409_v56 = vsel %vm169_vm2, %v2405_v39, %v2406_v4  ;;  %v2427_v8 = vsel %vm222_vm5, %v2423_v51, 0.0  ;;  %v2420_v15 = vsel %vm206_vm3, %v2418_v49, %v2419_v3 }
 0xcb9   :  { %v2425_v50 = vsel %vm220_vm4, %v2421_v7, 0.0  ;;  %v2412_v9 = vsel %vm178_vm6, %v2411_v27, 0.0  ;;  %v2408_v24 = vsel %vm169_vm2, %v2406_v4, %v2407_v28  ;;  %v2414_v58 = vsel %vm178_vm6, %v2409_v56, 0.0 }
 0xcba   :  { %2450 = vrot.lane.b32.xlu1 %v2425_v50, %s3365_s0  ;;  %2436 = vrot.lane.b32.xlu0 %v2399_v14, %s3363_s28  ;;  %s3382_s28 = smov 122   ;;  %vm2730_vm5 = vcmask 23552  }
 0xcbe   :  { %2454 = vrot.lane.b32.xlu1 %v2427_v8, %s3365_s0  ;;  %2452 = vrot.lane.b32.xlu0 %v2420_v15, %s3365_s0 }
 0xcc2   :  { %2578 = vrot.lane.b32.xlu1 %v2397_v30, %s3368_s11  ;;  %1916 = vrot.lane.b32.xlu0 %v4045_v20, %s3381_s1 }
 0xcc6   :  { %2580 = vrot.lane.b32.xlu0 %v2398_v32, %s3368_s11 }
 0xcca   :  { %3331 = vrot.lane.b32.xlu0 %v3330_v22, %s3382_s28 }
 0xcce   :  { %2582 = vrot.lane.b32.xlu0 %v2399_v14, %s3368_s11 }
 0xd23   :  { %v2435_v18 = vpop.permute.xlu1 %2434 }
 0xd24   :  { %v2433_v42 = vpop.permute.xlu0 %2432  ;;  %v2461_v26 = vsel %vm61_vm0, %v2410_v60, %v2435_v18 }
 0xd25   :  { %v2460_v20 = vsel %vm61_vm0, %v2412_v9, %v2433_v42 }
 0xd27   :  { %v2439_v10 = vpop.permute.xlu1 %2438 }
 0xd28   :  { %v2449_v35 = vpop.permute.xlu0 %2448  ;;  %v2463_v21 = vsel %vm61_vm0, %v2408_v24, %v2439_v10 }
 0xd29   :  { %v2464_v19 = vsel %vm271_vm9, %v2460_v20, %v2449_v35 }
 0xd2a   :  { %3092 = vmatprep.mubr.msk.f32.mxu1 %vm286_vm10, %v2464_v19 }
 0xd2c   :  { %v2451_v55 = vpop.permute.xlu1 %2450  ;;  %v2437_v57 = vpop.permute.xlu0 %2436 }
 0xd2d   :  { %v2465_v59 = vsel %vm271_vm9, %v2461_v26, %v2451_v55  ;;  %v2462_v61 = vsel %vm61_vm0, %v2414_v58, %v2437_v57  ;;  %vm4287_vm0 = vmmov %vm4286_vm7 }
 0xd2e   :  { %3093 = vmatmul.mubr.msk.f32.vlgmr.msra.gmra.mrb[26].mxu1 %vm286_vm10, %v2465_v59  ;;  %vm4288_vm2 = vmmov %vm4287_vm0 }
 0xd2f   :  { %vm4289_vm3 = vmmov %vm4287_vm0 }
 0xd30   :  { %v2455_v62 = vpop.permute.xlu1 %2454  ;;  %v2453_v63 = vpop.permute.xlu0 %2452  ;;  %vm4290_vm4 = vmmov %vm4287_vm0 }
 0xd31   :  { %v2467_v48 = vsel %vm271_vm9, %v2463_v21, %v2455_v62  ;;  %v2466_v11 = vsel %vm271_vm9, %v2462_v61, %v2453_v63 }
 0xd32   :  { %3095 = vmatprep.mubr.msk.f32.mxu1 %vm286_vm10, %v2466_v11 }
 0xd33   :  { %3096 = vmatmul.mubr.msk.f32.gmra.mrb[28].mxu1 %vm286_vm10, %v2467_v48 }
 0xd34   :  { %v1917_v12 = vpop.permute.xlu0 %1916  ;;  %v2579_v45 = vpop.permute.xlu1 %2578 }
 0xd35   :  { %v2003_v1 = vadd.f32 %v4123_v53, %v1917_v12  ;;  %v1998_v34 = vadd.f32 %v4128_v6, %v1917_v12  ;;  %v2008_v36 = vadd.f32 %v4139_v0, %v1917_v12  ;;  %v2013_v13 = vadd.f32 %v4134_v2, %v1917_v12  ;;  %v2807_v53 = vld [vmem:[%s4276_s2 + $0x1] ss:$0 sm:$0xff] }
 0xd36   :  { %v2606_v3 = vsel %vm447_vm12, %v4097_v52, %v2579_v45 }
 0xd38   :  { %v2581_v16 = vpop.permute.xlu0 %2580 }
 0xd39   :  { %v2607_v46 = vsel %vm447_vm12, %v4095_v31, %v2581_v16 }
 0xd3c   :  { %v3332_v17 = vpop.permute.xlu0 %3331 }
 0xd3d   :  { %v3334_v23 = vunpack.i.h.bf16 %v3332_v17  ;;  %v3333_v25 = vunpack.i.l.bf16 %v3332_v17 }
 0xd3f   :  { %v3204_v29 = vpack.c.bf16 %v3334_v23, %v3333_v25 }
 0xd40   :  { %v2583_v60 = vpop.permute.xlu0 %2582 }
 0xd41   :  { %3206 = vmatprep.subr.msk.bf16.mxu0 %vm3496_vm8, %v3204_v29  ;;  %v2608_v7 = vsel %vm447_vm12, %v4107_v44, %v2583_v60 }
 0xd42   :  { %3209 = vmatpush3.bf16.msk.msra.mxu0 %vm3496_vm8, %v3204_v29 }
 0xe01   :  { %v3094_v6 = vpop.f32.mrb[26].mxu1 }
 0xe02   :  { %v2561_v32 = vadd.f32 %v3094_v6, %v2807_v53  ;;  %v2555_v0 = vpop.f32.mrb[27].mxu1 }
 0xe03   :  { %v2556_v2 = vadd.f32 %v2807_v53, %v2555_v0 }
 0xe04   :  { %v2575_v30 = vmax.f32 %v2561_v32, 0.0 }
 0xe05   :  { %v2574_v37 = vmax.f32 %v2556_v2, 0.0 }
 0xe06   :  { %2596 = vrot.lane.b32.xlu1 %v2575_v30, %s3370_s13  ;;  %v3097_v33 = vpop.f32.mrb[28].mxu1 }
 0xe07   :  { %v2565_v54 = vpop.f32.mrb[29].mxu1  ;;  %v2571_v40 = vadd.f32 %v3097_v33, %v2807_v53 }
 0xe08   :  { %v2566_v38 = vadd.f32 %v2807_v53, %v2565_v54 }
 0xe09   :  { %v2577_v41 = vmax.f32 %v2571_v40, 0.0 }
 0xe0a   :  { %v2576_v39 = vmax.f32 %v2566_v38, 0.0  ;;  %2594 = vrot.lane.b32.xlu1 %v2574_v37, %s3370_s13 }
 0xe0c   :  { %2598 = vrot.lane.b32.xlu0 %v2576_v39, %s3370_s13 }
 0xe0e   :  { %2584 = vrot.lane.b32.xlu1 %v4175_v47, %s3368_s11 }
 0xe10   :  { %2628 = vrot.lane.b32.xlu0 %v2807_v53, %s3382_s28 }
 0xe12   :  { %2600 = vrot.lane.b32.xlu1 %v2577_v41, %s3370_s13 }
 0xe78   :  { %v2597_v14 = vpop.permute.xlu1 %2596 }
 0xe79   :  { %v2611_v5 = vsel %vm4287_vm0, %v2607_v46, %v2597_v14 }
 0xe7a   :  { %v2615_v49 = vadd.f32 %v2611_v5, %v2003_v1 }
 0xe7c   :  { %v2595_v4 = vpop.permute.xlu1 %2594  ;;  %v2619_v22 = vmax.f32 %v2615_v49, 0.0 }
 0xe7d   :  { %v2610_v47 = vsel %vm4288_vm2, %v2606_v3, %v2595_v4 }
 0xe7e   :  { %v2614_v50 = vadd.f32 %v2610_v47, %v1998_v34  ;;  %v2599_v56 = vpop.permute.xlu0 %2598 }
 0xe7f   :  { %v2612_v51 = vsel %vm4289_vm3, %v2608_v7, %v2599_v56 }
 0xe80   :  { %v2618_v8 = vmax.f32 %v2614_v50, 0.0  ;;  %v2616_v31 = vadd.f32 %v2612_v51, %v2008_v36  ;;  %v2585_v15 = vpop.permute.xlu1 %2584 }
 0xe81   :  { %v2609_v52 = vsel %vm447_vm12, %v4105_v43, %v2585_v15 }
 0xe82   :  { %v2620_v28 = vmax.f32 %v2616_v31, 0.0  ;;  %3102 = vmatprep.mubr.msk.f32.mxu0 %vm286_vm10, %v2618_v8  ;;  %v2629_v9 = vpop.permute.xlu0 %2628 }
 0xe83   :  { %3103 = vmatmul.mubr.msk.f32.vlgmr.msra.gmra.mrb[22].mxu0 %vm286_vm10, %v2619_v22 }
 0xe84   :  { %3105 = vmatprep.mubr.msk.f32.mxu0 %vm286_vm10, %v2620_v28  ;;  %v2601_v18 = vpop.permute.xlu1 %2600 }
 0xe85   :  { %v2613_v44 = vsel %vm4290_vm4, %v2609_v52, %v2601_v18 }
 0xe86   :  { %v2617_v42 = vadd.f32 %v2613_v44, %v2013_v13 }
 0xe88   :  { %v2621_v27 = vmax.f32 %v2617_v42, 0.0 }
 0xe8a   :  { %3106 = vmatmul.mubr.msk.f32.gmra.mrb[24].mxu0 %vm286_vm10, %v2621_v27 }
 0xf56   :  { %v3104_v10 = vpop.f32.mrb[22].mxu0 }
 0xf57   :  { %v2717_v20 = vadd.f32 %v3104_v10, %v2629_v9  ;;  %v2711_v35 = vpop.f32.mrb[23].mxu0 }
 0xf58   :  { %v2712_v19 = vadd.f32 %v2711_v35, %v2629_v9 }
 0xf59   :  { %2732 = vst.msk [vmem:[%s4277_s3 + $0x8] sm:$0xff] %vm2730_vm5, %v2717_v20 }
 0xf5a   :  { %2731 = vst.msk [vmem:[%s4277_s3] sm:$0xff] %vm2730_vm5, %v2712_v19 }
 0xf5d   :  { %v3107_v43 = vpop.f32.mrb[24].mxu0 }
 0xf5e   :  { %v2727_v26 = vadd.f32 %v3107_v43, %v2629_v9  ;;  %v2721_v55 = vpop.f32.mrb[25].mxu0 }
 0xf5f   :  { %v2722_v57 = vadd.f32 %v2721_v55, %v2629_v9 }
 0xf60   :  { %2734 = vst.msk [vmem:[%s4277_s3 + $0x18] sm:$0xff] %vm2730_vm5, %v2727_v26 }
 0xf61   :  { %2733 = vst.msk [vmem:[%s4277_s3 + $0x10] sm:$0xff] %vm2730_vm5, %v2722_v57 }
 0xf62   :  { %2739 = vsyncpa [#allocation4], 1 }

</bundles_post_ra>
